<compile_context>
chip_gen: v7x
topology: tpu7x:2x2x1
jax: 0.10.0
libtpu: 0.0.40
codegen_flags: <defaults>
</compile_context>

<pallas_src>
import functools
import math

import jax
import jax.numpy as jnp
import numpy as np
from jax.experimental import pallas as pl
from jax.experimental.pallas import tpu as pltpu

# ----------------------------------------------------------------------------
# Model config (tiny BERT encoder + pooler + Linear(hidden, 1) + sigmoid)
# ----------------------------------------------------------------------------
CFG = dict(vocab=100, hidden=32, layers=2, heads=2, intermediate=64,
           max_pos=16, type_vocab=2)
LANE = 128


def _r8(n):
    return (n + 7) // 8 * 8


def _make_layout():
    """Static slab layout. weights: name -> (row0, rows, cols); vectors: name -> (row, cols)."""
    H, I, L = CFG["hidden"], CFG["intermediate"], CFG["layers"]
    V, P, T = CFG["vocab"], CFG["max_pos"], CFG["type_vocab"]

    wlay, r = {}, 0

    def addw(name, nr, nc):
        nonlocal r
        wlay[name] = (r, nr, nc)
        r += _r8(nr)                      # every block starts on an 8-row boundary

    addw("word", V, H)                    # padded rows beyond vocab stay zero
    addw("pos", P, H)
    addw("type", T, H)
    for l in range(L):
        for nm in ("wq", "wk", "wv", "wo"):
            addw(f"{nm}_{l}", H, H)
        addw(f"w1_{l}", H, I)
        addw(f"w2_{l}", I, H)
    addw("pool_w", H, H)
    wrows = r

    vlay, rv = {}, 0

    def addv(name, nc):
        nonlocal rv
        vlay[name] = (rv, nc)
        rv += 1

    addv("emb_ln_g", H)
    addv("emb_ln_b", H)
    for l in range(L):
        for nm, nc in (("bq", H), ("bk", H), ("bv", H), ("bo", H),
                       ("ln1g", H), ("ln1b", H), ("fb1", I), ("fb2", H),
                       ("ln2g", H), ("ln2b", H)):
            addv(f"{nm}_{l}", nc)
    addv("pool_b", H)
    addv("cls_w", H)                      # classifier weight stored as a row vector
    addv("cls_b", 1)
    return wlay, wrows, vlay, _r8(rv)


WLAY, WROWS, VLAY, VROWS = _make_layout()


# ----------------------------------------------------------------------------
# Fused forward kernel: embeddings -> 2 transformer layers -> pooler -> head
# ----------------------------------------------------------------------------
def _fused_forward_kernel(ids_ref, mask_ref, w_ref, v_ref, o_ref, *,
                          Bt, S, H, Hn, L, Vp):
    f32, bf16 = jnp.float32, jnp.bfloat16
    Dh = H // Hn
    N = Bt * S
    scale = 1.0 / math.sqrt(Dh)

    def W(name):                          # (rows, cols) f32 view of the weight slab
        r0, nr, nc = WLAY[name]
        return w_ref[r0:r0 + nr, :nc]

    def V(name):                          # (1, cols) f32 view of the vector slab
        r, nc = VLAY[name]
        return v_ref[r:r + 1, :nc]

    def mm(a, w, b=None):                 # bf16 MXU matmul, f32 accumulation
        y = jnp.dot(a.astype(bf16), w.astype(bf16), preferred_element_type=f32)
        return y if b is None else y + b

    def layernorm(x, g, b):               # eps = 1e-12 (HF BERT default), f32 math
        mu = jnp.mean(x, axis=-1, keepdims=True)
        xc = x - mu
        var = jnp.mean(xc * xc, axis=-1, keepdims=True)
        return xc * jax.lax.rsqrt(var + 1e-12) * g + b

    def gelu(y):
        # TODO(synk): tanh-approx GELU; HF BERT default is exact erf (~1e-3 drift).
        c = 0.7978845608028654            # sqrt(2/pi)
        return 0.5 * y * (1.0 + jnp.tanh(c * (y + 0.044715 * y * y * y)))

    # --- embeddings: in-kernel gather via one-hot MXU matmul (f32, exact sel) --
    ids = ids_ref[...]                                            # (Bt, S) int32
    onehot = (ids[:, :, None] ==
              jax.lax.broadcasted_iota(jnp.int32, (Bt, S, Vp), 2)
              ).astype(f32).reshape(N, Vp)                        # (N, Vp)
    r0w = WLAY["word"][0]
    word_tbl = w_ref[r0w:r0w + Vp, :H]                            # zero-padded rows
    emb = jnp.dot(onehot, word_tbl, preferred_element_type=f32)   # (N, H)
    r0p = WLAY["pos"][0]
    pos_e = w_ref[r0p:r0p + S, :H]                                # (S, H)
    r0t = WLAY["type"][0]
    type_e = w_ref[r0t:r0t + 1, :H]                               # (1, H): type id 0
    emb = (emb.reshape(Bt, S, H) + pos_e[None, :, :]
           + type_e.reshape(1, 1, H)).reshape(N, H)
    x = layernorm(emb, V("emb_ln_g"), V("emb_ln_b"))              # (N, H)

    # --- additive attention-mask bias, (head, batch) folded into batch dim ----
    mb = (1.0 - mask_ref[...].astype(f32)) * (-1e9)               # (Bt, S)
    mb_hb = jnp.broadcast_to(mb[None, :, None, :],
                             (Hn, Bt, 1, S)).reshape(Hn * Bt, 1, S)

    # --- transformer layers (static unroll, everything VMEM-resident) ---------
    for l in range(L):
        xb = x.astype(bf16)
        wq, wk, wv = W(f"wq_{l}"), W(f"wk_{l}"), W(f"wv_{l}")
        bq, bk, bv = V(f"bq_{l}"), V(f"bk_{l}"), V(f"bv_{l}")

        qs, ks, vs = [], [], []
        for h in range(Hn):               # head split on the WEIGHT side only
            sl = slice(h * Dh, (h + 1) * Dh)
            qs.append((mm(xb, wq[:, sl]) + bq[:, sl]).reshape(Bt, S, Dh))
            ks.append((mm(xb, wk[:, sl]) + bk[:, sl]).reshape(Bt, S, Dh))
            vs.append((mm(xb, wv[:, sl]) + bv[:, sl]).reshape(Bt, S, Dh))
        qb = jnp.stack(qs, 0).reshape(Hn * Bt, S, Dh)             # (Hn*Bt, S, Dh)
        kb = jnp.stack(ks, 0).reshape(Hn * Bt, S, Dh)
        vb = jnp.stack(vs, 0).reshape(Hn * Bt, S, Dh)

        # one batched contraction pair per stage; exact-divide softmax in f32
        s = jax.lax.dot_general(qb.astype(bf16), kb.astype(bf16),
                                (((2,), (2,)), ((0,), (0,))),
                                preferred_element_type=f32) * scale
        s = s + mb_hb
        s = s - jnp.max(s, axis=-1, keepdims=True)
        p = jnp.exp(s)
        p = p / jnp.sum(p, axis=-1, keepdims=True)
        ctx = jax.lax.dot_general(p.astype(bf16), vb.astype(bf16),
                                  (((2,), (1,)), ((0,), (0,))),
                                  preferred_element_type=f32)     # (Hn*Bt, S, Dh)

        # output projection as a per-head sum: no lane-axis concat of ctx
        wo = W(f"wo_{l}")
        attn = V(f"bo_{l}")
        for h in range(Hn):
            ch = ctx[h * Bt:(h + 1) * Bt].reshape(N, Dh)
            attn = attn + mm(ch, wo[h * Dh:(h + 1) * Dh, :])
        x = layernorm(attn + x, V(f"ln1g_{l}"), V(f"ln1b_{l}"))

        hmid = gelu(mm(x, W(f"w1_{l}"), V(f"fb1_{l}")))
        ffn = mm(hmid, W(f"w2_{l}"), V(f"fb2_{l}"))
        x = layernorm(ffn + x, V(f"ln2g_{l}"), V(f"ln2b_{l}"))

    # --- pooler: tanh(W_pool . hidden[:, 0]) -----------------------------------
    cls = x.reshape(Bt, S, H)[:, 0:1, :].reshape(Bt, H)
    pooled = jnp.tanh(mm(cls, W("pool_w"), V("pool_b")))          # (Bt, H)

    # --- classifier: sigmoid(Linear(H, 1)) as a lane reduce (no 1-lane matmul) -
    logit = jnp.sum(pooled * V("cls_w"), axis=-1, keepdims=True) + V("cls_b")
    o_ref[...] = 0.5 * (jnp.tanh(0.5 * logit) + 1.0)              # stable sigmoid


# ----------------------------------------------------------------------------
# Parameters + host-side (one-time) slab packing
# ----------------------------------------------------------------------------
def init_params(key):
    H, I, L = CFG["hidden"], CFG["intermediate"], CFG["layers"]
    ks = iter(jax.random.split(key, 64))
    n = lambda shape: jax.random.normal(next(ks), shape, jnp.float32) * 0.02
    p = {
        "word": n((CFG["vocab"], H)),
        "pos": n((CFG["max_pos"], H)),
        "type": n((CFG["type_vocab"], H)),
        "emb_ln_g": jnp.ones((H,), jnp.float32),
        "emb_ln_b": jnp.zeros((H,), jnp.float32),
        "pool_w": n((H, H)),
        "pool_b": jnp.zeros((H,), jnp.float32),
        "cls_w": n((H,)),
        "cls_b": jnp.zeros((1,), jnp.float32),
    }
    for l in range(L):
        p[f"wq_{l}"], p[f"wk_{l}"] = n((H, H)), n((H, H))
        p[f"wv_{l}"], p[f"wo_{l}"] = n((H, H)), n((H, H))
        p[f"w1_{l}"], p[f"w2_{l}"] = n((H, I)), n((I, H))
        for nm, d in (("bq", H), ("bk", H), ("bv", H), ("bo", H),
                      ("ln1g", H), ("ln1b", H), ("fb1", I), ("fb2", H),
                      ("ln2g", H), ("ln2b", H)):
            p[f"{nm}_{l}"] = (jnp.ones((d,), jnp.float32)
                              if (nm.startswith("ln") and nm.endswith("g"))
                              else jnp.zeros((d,), jnp.float32))
    return p


def pack_params(params):
    """Pack all operands into two lane-padded f32 slabs (done once, host-side)."""
    wslab = np.zeros((WROWS, LANE), np.float32)
    for name, (r0, nr, nc) in WLAY.items():
        wslab[r0:r0 + nr, :nc] = np.asarray(params[name], np.float32)
    vslab = np.zeros((VROWS, LANE), np.float32)
    for name, (r, nc) in VLAY.items():
        vslab[r, :nc] = np.asarray(params[name], np.float32).reshape(nc)
    return jnp.asarray(wslab), jnp.asarray(vslab)


# ----------------------------------------------------------------------------
# Forward: a single fused Pallas call (no plain-JAX glue at all)
# ----------------------------------------------------------------------------
def model_forward(wslab, vslab, input_ids, attention_mask):
    B, S = input_ids.shape
    H, Hn, L = CFG["hidden"], CFG["heads"], CFG["layers"]
    Bt = B                                # batch tile (degenerate grid today)
    Vp = _r8(CFG["vocab"])

    kernel = functools.partial(_fused_forward_kernel,
                               Bt=Bt, S=S, H=H, Hn=Hn, L=L, Vp=Vp)
    return pl.pallas_call(
        kernel,
        out_shape=jax.ShapeDtypeStruct((B, 1), jnp.float32),
        grid=(pl.cdiv(B, Bt),),
        in_specs=[
            pl.BlockSpec((Bt, S), lambda i: (i, 0)),            # input_ids
            pl.BlockSpec((Bt, S), lambda i: (i, 0)),            # attention_mask
            pl.BlockSpec((WROWS, LANE), lambda i: (0, 0)),      # weight slab
            pl.BlockSpec((VROWS, LANE), lambda i: (0, 0)),      # vector slab
        ],
        out_specs=pl.BlockSpec((Bt, 1), lambda i: (i, 0)),
        compiler_params=pltpu.CompilerParams(
            dimension_semantics=("parallel",)),
    )(input_ids, attention_mask, wslab, vslab)


# ----------------------------------------------------------------------------
# Pure-JAX f32 reference (for a loose correctness check)
# ----------------------------------------------------------------------------
def reference_forward(params, input_ids, attention_mask):
    H, Hn, L = CFG["hidden"], CFG["heads"], CFG["layers"]
    Dh = H // Hn
    B, S = input_ids.shape

    def ln(x, g, b):
        mu = jnp.mean(x, -1, keepdims=True)
        var = jnp.mean((x - mu) ** 2, -1, keepdims=True)
        return (x - mu) * jax.lax.rsqrt(var + 1e-12) * g + b

    def gelu(y):
        c = 0.7978845608028654
        return 0.5 * y * (1.0 + jnp.tanh(c * (y + 0.044715 * y ** 3)))

    x = (params["word"][input_ids] + params["pos"][:S][None]
         + params["type"][0][None, None])
    x = ln(x, params["emb_ln_g"], params["emb_ln_b"])
    bias = (1.0 - attention_mask.astype(jnp.float32))[:, None, None, :] * (-1e9)
    for l in range(L):
        q = x @ params[f"wq_{l}"] + params[f"bq_{l}"]
        k = x @ params[f"wk_{l}"] + params[f"bk_{l}"]
        v = x @ params[f"wv_{l}"] + params[f"bv_{l}"]
        split = lambda t: t.reshape(B, S, Hn, Dh).transpose(0, 2, 1, 3)
        s = jnp.einsum("bhqd,bhkd->bhqk", split(q), split(k)) / math.sqrt(Dh) + bias
        p = jax.nn.softmax(s, axis=-1)
        ctx = jnp.einsum("bhqk,bhkd->bhqd", p, split(v)
                         ).transpose(0, 2, 1, 3).reshape(B, S, H)
        x = ln(ctx @ params[f"wo_{l}"] + params[f"bo_{l}"] + x,
               params[f"ln1g_{l}"], params[f"ln1b_{l}"])
        hmid = gelu(x @ params[f"w1_{l}"] + params[f"fb1_{l}"])
        x = ln(hmid @ params[f"w2_{l}"] + params[f"fb2_{l}"] + x,
               params[f"ln2g_{l}"], params[f"ln2b_{l}"])
    pooled = jnp.tanh(x[:, 0, :] @ params["pool_w"] + params["pool_b"])
    logit = pooled @ params["cls_w"][:, None] + params["cls_b"]
    return jax.nn.sigmoid(logit)


if __name__ == "__main__":
    key = jax.random.PRNGKey(0)
    k_param, k_ids = jax.random.split(key)

    B, S = 2, 8
    params = init_params(k_param)
    wslab, vslab = pack_params(params)          # one-time host-side packing

    input_ids = jax.random.randint(k_ids, (B, S), 0, CFG["vocab"], dtype=jnp.int32)
    attention_mask = jnp.ones((B, S), jnp.int32).at[1, 6:].set(0)

    forward = jax.jit(model_forward)
    out = jax.block_until_ready(forward(wslab, vslab, input_ids, attention_mask))

    ref = reference_forward(params, input_ids, attention_mask)
    assert out.shape == (B, 1)
    assert bool(jnp.all((out >= 0.0) & (out <= 1.0)))
    assert bool(jnp.allclose(out, ref, atol=2e-2)), (out, ref)
    print("KERNEL_OK")
</pallas_src>

<mosaic_0001>
module attributes {stable_mosaic.version = 11 : i64} {
  func.func @_fused_forward_kernel(%arg0: i32, %arg1: memref<2x8xi32, #tpu.memory_space<vmem>>, %arg2: memref<2x8xi32, #tpu.memory_space<vmem>>, %arg3: memref<608x128xf32, #tpu.memory_space<vmem>>, %arg4: memref<32x128xf32, #tpu.memory_space<vmem>>, %arg5: memref<2x1xf32, #tpu.memory_space<vmem>>) attributes {dimension_semantics = [#tpu.dimension_semantics<parallel>], iteration_bounds = array<i64: 1>, scalar_prefetch = 0 : i64, scratch_operands = 0 : i64, tpu.core_type = #tpu.core_type<tc>, window_params = [{transform_indices = @transform_0, window_bounds = array<i64: 2, 8>}, {transform_indices = @transform_1, window_bounds = array<i64: 2, 8>}, {pipeline_mode = #tpu.pipeline_mode<synchronous>, transform_indices = @transform_2, window_bounds = array<i64: 608, 128>}, {pipeline_mode = #tpu.pipeline_mode<synchronous>, transform_indices = @transform_3, window_bounds = array<i64: 32, 128>}, {transform_indices = @transform_4, window_bounds = array<i64: 2, 1>}]} {
    %c0 = arith.constant 0 : index
    %c0_0 = arith.constant 0 : index
    %0 = vector.load %arg1[%c0, %c0_0] : memref<2x8xi32, #tpu.memory_space<vmem>>, vector<2x8xi32>
    %1 = vector.shape_cast %0 : vector<2x8xi32> to vector<2x8x1xi32>
    %2 = tpu.iota {dimensions = array<i32: 2>} : vector<2x8x104xi32>
    %3 = vector.broadcast %1 : vector<2x8x1xi32> to vector<2x8x104xi32>
    %4 = arith.cmpi eq, %3, %2 : vector<2x8x104xi32>
    %5 = arith.extui %4 : vector<2x8x104xi1> to vector<2x8x104xi32>
    %6 = arith.sitofp %5 : vector<2x8x104xi32> to vector<2x8x104xf32>
    %7 = vector.shape_cast %6 : vector<2x8x104xf32> to vector<16x104xf32>
    %c0_1 = arith.constant 0 : index
    %c0_2 = arith.constant 0 : index
    %8 = vector.load %arg3[%c0_1, %c0_2] : memref<608x128xf32, #tpu.memory_space<vmem>>, vector<104x32xf32>
    %cst = arith.constant dense<0.000000e+00> : vector<16x32xf32>
    %9 = tpu.matmul %7, %8, %cst {dimension_numbers = #tpu.dot_dimension_numbers<[1], [0], [0], [1], [0, 0, 1, 1], [], []>} : vector<16x104xf32>, vector<104x32xf32>, vector<16x32xf32> -> vector<16x32xf32>
    %c104 = arith.constant 104 : index
    %c0_3 = arith.constant 0 : index
    %10 = vector.load %arg3[%c104, %c0_3] : memref<608x128xf32, #tpu.memory_space<vmem>>, vector<8x32xf32>
    %c120 = arith.constant 120 : index
    %c0_4 = arith.constant 0 : index
    %11 = vector.load %arg3[%c120, %c0_4] : memref<608x128xf32, #tpu.memory_space<vmem>>, vector<1x32xf32>
    %12 = vector.shape_cast %9 : vector<16x32xf32> to vector<2x8x32xf32>
    %13 = vector.shape_cast %10 : vector<8x32xf32> to vector<1x8x32xf32>
    %14 = vector.broadcast %13 : vector<1x8x32xf32> to vector<2x8x32xf32>
    %15 = arith.addf %12, %14 : vector<2x8x32xf32>
    %16 = vector.shape_cast %11 : vector<1x32xf32> to vector<1x1x32xf32>
    %17 = vector.broadcast %16 : vector<1x1x32xf32> to vector<2x8x32xf32>
    %18 = arith.addf %15, %17 : vector<2x8x32xf32>
    %19 = vector.shape_cast %18 : vector<2x8x32xf32> to vector<16x32xf32>
    %c0_5 = arith.constant 0 : index
    %c0_6 = arith.constant 0 : index
    %20 = vector.load %arg4[%c0_5, %c0_6] : memref<32x128xf32, #tpu.memory_space<vmem>>, vector<1x32xf32>
    %c1 = arith.constant 1 : index
    %c0_7 = arith.constant 0 : index
    %21 = vector.load %arg4[%c1, %c0_7] : memref<32x128xf32, #tpu.memory_space<vmem>>, vector<1x32xf32>
    %cst_8 = arith.constant dense<0.000000e+00> : vector<16xf32>
    %22 = vector.multi_reduction <add>, %19, %cst_8 [1] : vector<16x32xf32> to vector<16xf32>
    %23 = vector.shape_cast %22 : vector<16xf32> to vector<16x1xf32>
    %cst_9 = arith.constant 3.200000e+01 : f32
    %24 = vector.broadcast %cst_9 : f32 to vector<16x1xf32>
    %25 = arith.divf %23, %24 : vector<16x1xf32>
    %26 = vector.broadcast %25 : vector<16x1xf32> to vector<16x32xf32>
    %27 = arith.subf %19, %26 : vector<16x32xf32>
    %28 = arith.mulf %27, %27 : vector<16x32xf32>
    %cst_10 = arith.constant dense<0.000000e+00> : vector<16xf32>
    %29 = vector.multi_reduction <add>, %28, %cst_10 [1] : vector<16x32xf32> to vector<16xf32>
    %30 = vector.shape_cast %29 : vector<16xf32> to vector<16x1xf32>
    %cst_11 = arith.constant 3.200000e+01 : f32
    %31 = vector.broadcast %cst_11 : f32 to vector<16x1xf32>
    %32 = arith.divf %30, %31 : vector<16x1xf32>
    %cst_12 = arith.constant 9.99999996E-13 : f32
    %33 = vector.broadcast %cst_12 : f32 to vector<16x1xf32>
    %34 = arith.addf %32, %33 : vector<16x1xf32>
    %35 = math.rsqrt %34 : vector<16x1xf32>
    %36 = vector.broadcast %35 : vector<16x1xf32> to vector<16x32xf32>
    %37 = arith.mulf %27, %36 : vector<16x32xf32>
    %38 = vector.broadcast %20 : vector<1x32xf32> to vector<16x32xf32>
    %39 = arith.mulf %37, %38 : vector<16x32xf32>
    %40 = vector.broadcast %21 : vector<1x32xf32> to vector<16x32xf32>
    %41 = arith.addf %39, %40 : vector<16x32xf32>
    %c0_13 = arith.constant 0 : index
    %c0_14 = arith.constant 0 : index
    %42 = vector.load %arg2[%c0_13, %c0_14] : memref<2x8xi32, #tpu.memory_space<vmem>>, vector<2x8xi32>
    %43 = arith.sitofp %42 : vector<2x8xi32> to vector<2x8xf32>
    %cst_15 = arith.constant 1.000000e+00 : f32
    %44 = vector.broadcast %cst_15 : f32 to vector<2x8xf32>
    %45 = arith.subf %44, %43 : vector<2x8xf32>
    %cst_16 = arith.constant -1.000000e+09 : f32
    %46 = vector.broadcast %cst_16 : f32 to vector<2x8xf32>
    %47 = arith.mulf %45, %46 : vector<2x8xf32>
    %48 = vector.shape_cast %47 : vector<2x8xf32> to vector<1x2x1x8xf32>
    %49 = vector.shape_cast %48 : vector<1x2x1x8xf32> to vector<1x2x1x8xf32>
    %50 = vector.broadcast %49 : vector<1x2x1x8xf32> to vector<2x2x1x8xf32>
    %51 = vector.shape_cast %50 : vector<2x2x1x8xf32> to vector<4x1x8xf32>
    %52 = arith.truncf %41 : vector<16x32xf32> to vector<16x32xbf16>
    %c128 = arith.constant 128 : index
    %c0_17 = arith.constant 0 : index
    %53 = vector.load %arg3[%c128, %c0_17] : memref<608x128xf32, #tpu.memory_space<vmem>>, vector<32x32xf32>
    %c160 = arith.constant 160 : index
    %c0_18 = arith.constant 0 : index
    %54 = vector.load %arg3[%c160, %c0_18] : memref<608x128xf32, #tpu.memory_space<vmem>>, vector<32x32xf32>
    %c192 = arith.constant 192 : index
    %c0_19 = arith.constant 0 : index
    %55 = vector.load %arg3[%c192, %c0_19] : memref<608x128xf32, #tpu.memory_space<vmem>>, vector<32x32xf32>
    %c2 = arith.constant 2 : index
    %c0_20 = arith.constant 0 : index
    %56 = vector.load %arg4[%c2, %c0_20] : memref<32x128xf32, #tpu.memory_space<vmem>>, vector<1x32xf32>
    %c3 = arith.constant 3 : index
    %c0_21 = arith.constant 0 : index
    %57 = vector.load %arg4[%c3, %c0_21] : memref<32x128xf32, #tpu.memory_space<vmem>>, vector<1x32xf32>
    %c4 = arith.constant 4 : index
    %c0_22 = arith.constant 0 : index
    %58 = vector.load %arg4[%c4, %c0_22] : memref<32x128xf32, #tpu.memory_space<vmem>>, vector<1x32xf32>
    %59 = vector.extract_strided_slice %53 {offsets = [0, 0], sizes = [32, 16], strides = [1, 1]} : vector<32x32xf32> to vector<32x16xf32>
    %60 = arith.truncf %59 : vector<32x16xf32> to vector<32x16xbf16>
    %cst_23 = arith.constant dense<0.000000e+00> : vector<16x16xf32>
    %61 = tpu.matmul %52, %60, %cst_23 {dimension_numbers = #tpu.dot_dimension_numbers<[1], [0], [0], [1], [0, 0, 1, 1], [], []>} : vector<16x32xbf16>, vector<32x16xbf16>, vector<16x16xf32> -> vector<16x16xf32>
    %62 = vector.extract_strided_slice %56 {offsets = [0, 0], sizes = [1, 16], strides = [1, 1]} : vector<1x32xf32> to vector<1x16xf32>
    %63 = vector.broadcast %62 : vector<1x16xf32> to vector<16x16xf32>
    %64 = arith.addf %61, %63 : vector<16x16xf32>
    %65 = vector.shape_cast %64 : vector<16x16xf32> to vector<2x8x16xf32>
    %66 = vector.extract_strided_slice %54 {offsets = [0, 0], sizes = [32, 16], strides = [1, 1]} : vector<32x32xf32> to vector<32x16xf32>
    %67 = arith.truncf %66 : vector<32x16xf32> to vector<32x16xbf16>
    %cst_24 = arith.constant dense<0.000000e+00> : vector<16x16xf32>
    %68 = tpu.matmul %52, %67, %cst_24 {dimension_numbers = #tpu.dot_dimension_numbers<[1], [0], [0], [1], [0, 0, 1, 1], [], []>} : vector<16x32xbf16>, vector<32x16xbf16>, vector<16x16xf32> -> vector<16x16xf32>
    %69 = vector.extract_strided_slice %57 {offsets = [0, 0], sizes = [1, 16], strides = [1, 1]} : vector<1x32xf32> to vector<1x16xf32>
    %70 = vector.broadcast %69 : vector<1x16xf32> to vector<16x16xf32>
    %71 = arith.addf %68, %70 : vector<16x16xf32>
    %72 = vector.shape_cast %71 : vector<16x16xf32> to vector<2x8x16xf32>
    %73 = vector.extract_strided_slice %55 {offsets = [0, 0], sizes = [32, 16], strides = [1, 1]} : vector<32x32xf32> to vector<32x16xf32>
    %74 = arith.truncf %73 : vector<32x16xf32> to vector<32x16xbf16>
    %cst_25 = arith.constant dense<0.000000e+00> : vector<16x16xf32>
    %75 = tpu.matmul %52, %74, %cst_25 {dimension_numbers = #tpu.dot_dimension_numbers<[1], [0], [0], [1], [0, 0, 1, 1], [], []>} : vector<16x32xbf16>, vector<32x16xbf16>, vector<16x16xf32> -> vector<16x16xf32>
    %76 = vector.extract_strided_slice %58 {offsets = [0, 0], sizes = [1, 16], strides = [1, 1]} : vector<1x32xf32> to vector<1x16xf32>
    %77 = vector.broadcast %76 : vector<1x16xf32> to vector<16x16xf32>
    %78 = arith.addf %75, %77 : vector<16x16xf32>
    %79 = vector.shape_cast %78 : vector<16x16xf32> to vector<2x8x16xf32>
    %80 = vector.extract_strided_slice %53 {offsets = [0, 16], sizes = [32, 16], strides = [1, 1]} : vector<32x32xf32> to vector<32x16xf32>
    %81 = arith.truncf %80 : vector<32x16xf32> to vector<32x16xbf16>
    %cst_26 = arith.constant dense<0.000000e+00> : vector<16x16xf32>
    %82 = tpu.matmul %52, %81, %cst_26 {dimension_numbers = #tpu.dot_dimension_numbers<[1], [0], [0], [1], [0, 0, 1, 1], [], []>} : vector<16x32xbf16>, vector<32x16xbf16>, vector<16x16xf32> -> vector<16x16xf32>
    %83 = vector.extract_strided_slice %56 {offsets = [0, 16], sizes = [1, 16], strides = [1, 1]} : vector<1x32xf32> to vector<1x16xf32>
    %84 = vector.broadcast %83 : vector<1x16xf32> to vector<16x16xf32>
    %85 = arith.addf %82, %84 : vector<16x16xf32>
    %86 = vector.shape_cast %85 : vector<16x16xf32> to vector<2x8x16xf32>
    %87 = vector.extract_strided_slice %54 {offsets = [0, 16], sizes = [32, 16], strides = [1, 1]} : vector<32x32xf32> to vector<32x16xf32>
    %88 = arith.truncf %87 : vector<32x16xf32> to vector<32x16xbf16>
    %cst_27 = arith.constant dense<0.000000e+00> : vector<16x16xf32>
    %89 = tpu.matmul %52, %88, %cst_27 {dimension_numbers = #tpu.dot_dimension_numbers<[1], [0], [0], [1], [0, 0, 1, 1], [], []>} : vector<16x32xbf16>, vector<32x16xbf16>, vector<16x16xf32> -> vector<16x16xf32>
    %90 = vector.extract_strided_slice %57 {offsets = [0, 16], sizes = [1, 16], strides = [1, 1]} : vector<1x32xf32> to vector<1x16xf32>
    %91 = vector.broadcast %90 : vector<1x16xf32> to vector<16x16xf32>
    %92 = arith.addf %89, %91 : vector<16x16xf32>
    %93 = vector.shape_cast %92 : vector<16x16xf32> to vector<2x8x16xf32>
    %94 = vector.extract_strided_slice %55 {offsets = [0, 16], sizes = [32, 16], strides = [1, 1]} : vector<32x32xf32> to vector<32x16xf32>
    %95 = arith.truncf %94 : vector<32x16xf32> to vector<32x16xbf16>
    %cst_28 = arith.constant dense<0.000000e+00> : vector<16x16xf32>
    %96 = tpu.matmul %52, %95, %cst_28 {dimension_numbers = #tpu.dot_dimension_numbers<[1], [0], [0], [1], [0, 0, 1, 1], [], []>} : vector<16x32xbf16>, vector<32x16xbf16>, vector<16x16xf32> -> vector<16x16xf32>
    %97 = vector.extract_strided_slice %58 {offsets = [0, 16], sizes = [1, 16], strides = [1, 1]} : vector<1x32xf32> to vector<1x16xf32>
    %98 = vector.broadcast %97 : vector<1x16xf32> to vector<16x16xf32>
    %99 = arith.addf %96, %98 : vector<16x16xf32>
    %100 = vector.shape_cast %99 : vector<16x16xf32> to vector<2x8x16xf32>
    %101 = vector.shape_cast %65 : vector<2x8x16xf32> to vector<1x2x8x16xf32>
    %102 = vector.shape_cast %86 : vector<2x8x16xf32> to vector<1x2x8x16xf32>
    %103 = tpu.concatenate %101, %102 in 0 : vector<1x2x8x16xf32>, vector<1x2x8x16xf32> -> vector<2x2x8x16xf32>
    %104 = vector.shape_cast %103 : vector<2x2x8x16xf32> to vector<4x8x16xf32>
    %105 = vector.shape_cast %72 : vector<2x8x16xf32> to vector<1x2x8x16xf32>
    %106 = vector.shape_cast %93 : vector<2x8x16xf32> to vector<1x2x8x16xf32>
    %107 = tpu.concatenate %105, %106 in 0 : vector<1x2x8x16xf32>, vector<1x2x8x16xf32> -> vector<2x2x8x16xf32>
    %108 = vector.shape_cast %107 : vector<2x2x8x16xf32> to vector<4x8x16xf32>
    %109 = vector.shape_cast %79 : vector<2x8x16xf32> to vector<1x2x8x16xf32>
    %110 = vector.shape_cast %100 : vector<2x8x16xf32> to vector<1x2x8x16xf32>
    %111 = tpu.concatenate %109, %110 in 0 : vector<1x2x8x16xf32>, vector<1x2x8x16xf32> -> vector<2x2x8x16xf32>
    %112 = vector.shape_cast %111 : vector<2x2x8x16xf32> to vector<4x8x16xf32>
    %113 = arith.truncf %104 : vector<4x8x16xf32> to vector<4x8x16xbf16>
    %114 = arith.truncf %108 : vector<4x8x16xf32> to vector<4x8x16xbf16>
    %cst_29 = arith.constant dense<0.000000e+00> : vector<4x8x8xf32>
    %115 = tpu.matmul %113, %114, %cst_29 {dimension_numbers = #tpu.dot_dimension_numbers<[2], [2], [1], [1], [0, 0, 0, 1, 1, 1], [0], [0]>} : vector<4x8x16xbf16>, vector<4x8x16xbf16>, vector<4x8x8xf32> -> vector<4x8x8xf32>
    %cst_30 = arith.constant 2.500000e-01 : f32
    %116 = vector.broadcast %cst_30 : f32 to vector<4x8x8xf32>
    %117 = arith.mulf %115, %116 : vector<4x8x8xf32>
    %118 = vector.broadcast %51 : vector<4x1x8xf32> to vector<4x8x8xf32>
    %119 = arith.addf %117, %118 : vector<4x8x8xf32>
    %cst_31 = arith.constant dense<0xFF800000> : vector<4x8xf32>
    %120 = vector.multi_reduction <maximumf>, %119, %cst_31 [2] : vector<4x8x8xf32> to vector<4x8xf32>
    %121 = vector.shape_cast %120 : vector<4x8xf32> to vector<4x8x1xf32>
    %122 = vector.broadcast %121 : vector<4x8x1xf32> to vector<4x8x8xf32>
    %123 = arith.subf %119, %122 : vector<4x8x8xf32>
    %124 = math.exp %123 : vector<4x8x8xf32>
    %cst_32 = arith.constant dense<0.000000e+00> : vector<4x8xf32>
    %125 = vector.multi_reduction <add>, %124, %cst_32 [2] : vector<4x8x8xf32> to vector<4x8xf32>
    %126 = vector.shape_cast %125 : vector<4x8xf32> to vector<4x8x1xf32>
    %127 = vector.broadcast %126 : vector<4x8x1xf32> to vector<4x8x8xf32>
    %128 = arith.divf %124, %127 : vector<4x8x8xf32>
    %129 = arith.truncf %128 : vector<4x8x8xf32> to vector<4x8x8xbf16>
    %130 = arith.truncf %112 : vector<4x8x16xf32> to vector<4x8x16xbf16>
    %cst_33 = arith.constant dense<0.000000e+00> : vector<4x8x16xf32>
    %131 = tpu.matmul %129, %130, %cst_33 {dimension_numbers = #tpu.dot_dimension_numbers<[2], [1], [1], [2], [0, 0, 0, 1, 1, 2], [0], [0]>} : vector<4x8x8xbf16>, vector<4x8x16xbf16>, vector<4x8x16xf32> -> vector<4x8x16xf32>
    %c224 = arith.constant 224 : index
    %c0_34 = arith.constant 0 : index
    %132 = vector.load %arg3[%c224, %c0_34] : memref<608x128xf32, #tpu.memory_space<vmem>>, vector<32x32xf32>
    %c5 = arith.constant 5 : index
    %c0_35 = arith.constant 0 : index
    %133 = vector.load %arg4[%c5, %c0_35] : memref<32x128xf32, #tpu.memory_space<vmem>>, vector<1x32xf32>
    %134 = vector.extract_strided_slice %131 {offsets = [0, 0, 0], sizes = [2, 8, 16], strides = [1, 1, 1]} : vector<4x8x16xf32> to vector<2x8x16xf32>
    %135 = vector.shape_cast %134 : vector<2x8x16xf32> to vector<16x16xf32>
    %136 = vector.extract_strided_slice %132 {offsets = [0, 0], sizes = [16, 32], strides = [1, 1]} : vector<32x32xf32> to vector<16x32xf32>
    %137 = arith.truncf %135 : vector<16x16xf32> to vector<16x16xbf16>
    %138 = arith.truncf %136 : vector<16x32xf32> to vector<16x32xbf16>
    %cst_36 = arith.constant dense<0.000000e+00> : vector<16x32xf32>
    %139 = tpu.matmul %137, %138, %cst_36 {dimension_numbers = #tpu.dot_dimension_numbers<[1], [0], [0], [1], [0, 0, 1, 1], [], []>} : vector<16x16xbf16>, vector<16x32xbf16>, vector<16x32xf32> -> vector<16x32xf32>
    %140 = vector.broadcast %133 : vector<1x32xf32> to vector<16x32xf32>
    %141 = arith.addf %140, %139 : vector<16x32xf32>
    %142 = vector.extract_strided_slice %131 {offsets = [2, 0, 0], sizes = [2, 8, 16], strides = [1, 1, 1]} : vector<4x8x16xf32> to vector<2x8x16xf32>
    %143 = vector.shape_cast %142 : vector<2x8x16xf32> to vector<16x16xf32>
    %144 = vector.extract_strided_slice %132 {offsets = [16, 0], sizes = [16, 32], strides = [1, 1]} : vector<32x32xf32> to vector<16x32xf32>
    %145 = arith.truncf %143 : vector<16x16xf32> to vector<16x16xbf16>
    %146 = arith.truncf %144 : vector<16x32xf32> to vector<16x32xbf16>
    %cst_37 = arith.constant dense<0.000000e+00> : vector<16x32xf32>
    %147 = tpu.matmul %145, %146, %cst_37 {dimension_numbers = #tpu.dot_dimension_numbers<[1], [0], [0], [1], [0, 0, 1, 1], [], []>} : vector<16x16xbf16>, vector<16x32xbf16>, vector<16x32xf32> -> vector<16x32xf32>
    %148 = arith.addf %141, %147 : vector<16x32xf32>
    %149 = arith.addf %148, %41 : vector<16x32xf32>
    %c6 = arith.constant 6 : index
    %c0_38 = arith.constant 0 : index
    %150 = vector.load %arg4[%c6, %c0_38] : memref<32x128xf32, #tpu.memory_space<vmem>>, vector<1x32xf32>
    %c7 = arith.constant 7 : index
    %c0_39 = arith.constant 0 : index
    %151 = vector.load %arg4[%c7, %c0_39] : memref<32x128xf32, #tpu.memory_space<vmem>>, vector<1x32xf32>
    %cst_40 = arith.constant dense<0.000000e+00> : vector<16xf32>
    %152 = vector.multi_reduction <add>, %149, %cst_40 [1] : vector<16x32xf32> to vector<16xf32>
    %153 = vector.shape_cast %152 : vector<16xf32> to vector<16x1xf32>
    %cst_41 = arith.constant 3.200000e+01 : f32
    %154 = vector.broadcast %cst_41 : f32 to vector<16x1xf32>
    %155 = arith.divf %153, %154 : vector<16x1xf32>
    %156 = vector.broadcast %155 : vector<16x1xf32> to vector<16x32xf32>
    %157 = arith.subf %149, %156 : vector<16x32xf32>
    %158 = arith.mulf %157, %157 : vector<16x32xf32>
    %cst_42 = arith.constant dense<0.000000e+00> : vector<16xf32>
    %159 = vector.multi_reduction <add>, %158, %cst_42 [1] : vector<16x32xf32> to vector<16xf32>
    %160 = vector.shape_cast %159 : vector<16xf32> to vector<16x1xf32>
    %cst_43 = arith.constant 3.200000e+01 : f32
    %161 = vector.broadcast %cst_43 : f32 to vector<16x1xf32>
    %162 = arith.divf %160, %161 : vector<16x1xf32>
    %cst_44 = arith.constant 9.99999996E-13 : f32
    %163 = vector.broadcast %cst_44 : f32 to vector<16x1xf32>
    %164 = arith.addf %162, %163 : vector<16x1xf32>
    %165 = math.rsqrt %164 : vector<16x1xf32>
    %166 = vector.broadcast %165 : vector<16x1xf32> to vector<16x32xf32>
    %167 = arith.mulf %157, %166 : vector<16x32xf32>
    %168 = vector.broadcast %150 : vector<1x32xf32> to vector<16x32xf32>
    %169 = arith.mulf %167, %168 : vector<16x32xf32>
    %170 = vector.broadcast %151 : vector<1x32xf32> to vector<16x32xf32>
    %171 = arith.addf %169, %170 : vector<16x32xf32>
    %c256 = arith.constant 256 : index
    %c0_45 = arith.constant 0 : index
    %172 = vector.load %arg3[%c256, %c0_45] : memref<608x128xf32, #tpu.memory_space<vmem>>, vector<32x64xf32>
    %c8 = arith.constant 8 : index
    %c0_46 = arith.constant 0 : index
    %173 = vector.load %arg4[%c8, %c0_46] : memref<32x128xf32, #tpu.memory_space<vmem>>, vector<1x64xf32>
    %174 = arith.truncf %171 : vector<16x32xf32> to vector<16x32xbf16>
    %175 = arith.truncf %172 : vector<32x64xf32> to vector<32x64xbf16>
    %cst_47 = arith.constant dense<0.000000e+00> : vector<16x64xf32>
    %176 = tpu.matmul %174, %175, %cst_47 {dimension_numbers = #tpu.dot_dimension_numbers<[1], [0], [0], [1], [0, 0, 1, 1], [], []>} : vector<16x32xbf16>, vector<32x64xbf16>, vector<16x64xf32> -> vector<16x64xf32>
    %177 = vector.broadcast %173 : vector<1x64xf32> to vector<16x64xf32>
    %178 = arith.addf %176, %177 : vector<16x64xf32>
    %cst_48 = arith.constant 5.000000e-01 : f32
    %179 = vector.broadcast %cst_48 : f32 to vector<16x64xf32>
    %180 = arith.mulf %179, %178 : vector<16x64xf32>
    %cst_49 = arith.constant 4.471500e-02 : f32
    %181 = vector.broadcast %cst_49 : f32 to vector<16x64xf32>
    %182 = arith.mulf %181, %178 : vector<16x64xf32>
    %183 = arith.mulf %182, %178 : vector<16x64xf32>
    %184 = arith.mulf %183, %178 : vector<16x64xf32>
    %185 = arith.addf %178, %184 : vector<16x64xf32>
    %cst_50 = arith.constant 0.797884583 : f32
    %186 = vector.broadcast %cst_50 : f32 to vector<16x64xf32>
    %187 = arith.mulf %186, %185 : vector<16x64xf32>
    %188 = math.tanh %187 : vector<16x64xf32>
    %cst_51 = arith.constant 1.000000e+00 : f32
    %189 = vector.broadcast %cst_51 : f32 to vector<16x64xf32>
    %190 = arith.addf %189, %188 : vector<16x64xf32>
    %191 = arith.mulf %180, %190 : vector<16x64xf32>
    %c288 = arith.constant 288 : index
    %c0_52 = arith.constant 0 : index
    %192 = vector.load %arg3[%c288, %c0_52] : memref<608x128xf32, #tpu.memory_space<vmem>>, vector<64x32xf32>
    %c9 = arith.constant 9 : index
    %c0_53 = arith.constant 0 : index
    %193 = vector.load %arg4[%c9, %c0_53] : memref<32x128xf32, #tpu.memory_space<vmem>>, vector<1x32xf32>
    %194 = arith.truncf %191 : vector<16x64xf32> to vector<16x64xbf16>
    %195 = arith.truncf %192 : vector<64x32xf32> to vector<64x32xbf16>
    %cst_54 = arith.constant dense<0.000000e+00> : vector<16x32xf32>
    %196 = tpu.matmul %194, %195, %cst_54 {dimension_numbers = #tpu.dot_dimension_numbers<[1], [0], [0], [1], [0, 0, 1, 1], [], []>} : vector<16x64xbf16>, vector<64x32xbf16>, vector<16x32xf32> -> vector<16x32xf32>
    %197 = vector.broadcast %193 : vector<1x32xf32> to vector<16x32xf32>
    %198 = arith.addf %196, %197 : vector<16x32xf32>
    %199 = arith.addf %198, %171 : vector<16x32xf32>
    %c10 = arith.constant 10 : index
    %c0_55 = arith.constant 0 : index
    %200 = vector.load %arg4[%c10, %c0_55] : memref<32x128xf32, #tpu.memory_space<vmem>>, vector<1x32xf32>
    %c11 = arith.constant 11 : index
    %c0_56 = arith.constant 0 : index
    %201 = vector.load %arg4[%c11, %c0_56] : memref<32x128xf32, #tpu.memory_space<vmem>>, vector<1x32xf32>
    %cst_57 = arith.constant dense<0.000000e+00> : vector<16xf32>
    %202 = vector.multi_reduction <add>, %199, %cst_57 [1] : vector<16x32xf32> to vector<16xf32>
    %203 = vector.shape_cast %202 : vector<16xf32> to vector<16x1xf32>
    %cst_58 = arith.constant 3.200000e+01 : f32
    %204 = vector.broadcast %cst_58 : f32 to vector<16x1xf32>
    %205 = arith.divf %203, %204 : vector<16x1xf32>
    %206 = vector.broadcast %205 : vector<16x1xf32> to vector<16x32xf32>
    %207 = arith.subf %199, %206 : vector<16x32xf32>
    %208 = arith.mulf %207, %207 : vector<16x32xf32>
    %cst_59 = arith.constant dense<0.000000e+00> : vector<16xf32>
    %209 = vector.multi_reduction <add>, %208, %cst_59 [1] : vector<16x32xf32> to vector<16xf32>
    %210 = vector.shape_cast %209 : vector<16xf32> to vector<16x1xf32>
    %cst_60 = arith.constant 3.200000e+01 : f32
    %211 = vector.broadcast %cst_60 : f32 to vector<16x1xf32>
    %212 = arith.divf %210, %211 : vector<16x1xf32>
    %cst_61 = arith.constant 9.99999996E-13 : f32
    %213 = vector.broadcast %cst_61 : f32 to vector<16x1xf32>
    %214 = arith.addf %212, %213 : vector<16x1xf32>
    %215 = math.rsqrt %214 : vector<16x1xf32>
    %216 = vector.broadcast %215 : vector<16x1xf32> to vector<16x32xf32>
    %217 = arith.mulf %207, %216 : vector<16x32xf32>
    %218 = vector.broadcast %200 : vector<1x32xf32> to vector<16x32xf32>
    %219 = arith.mulf %217, %218 : vector<16x32xf32>
    %220 = vector.broadcast %201 : vector<1x32xf32> to vector<16x32xf32>
    %221 = arith.addf %219, %220 : vector<16x32xf32>
    %222 = arith.truncf %221 : vector<16x32xf32> to vector<16x32xbf16>
    %c352 = arith.constant 352 : index
    %c0_62 = arith.constant 0 : index
    %223 = vector.load %arg3[%c352, %c0_62] : memref<608x128xf32, #tpu.memory_space<vmem>>, vector<32x32xf32>
    %c384 = arith.constant 384 : index
    %c0_63 = arith.constant 0 : index
    %224 = vector.load %arg3[%c384, %c0_63] : memref<608x128xf32, #tpu.memory_space<vmem>>, vector<32x32xf32>
    %c416 = arith.constant 416 : index
    %c0_64 = arith.constant 0 : index
    %225 = vector.load %arg3[%c416, %c0_64] : memref<608x128xf32, #tpu.memory_space<vmem>>, vector<32x32xf32>
    %c12 = arith.constant 12 : index
    %c0_65 = arith.constant 0 : index
    %226 = vector.load %arg4[%c12, %c0_65] : memref<32x128xf32, #tpu.memory_space<vmem>>, vector<1x32xf32>
    %c13 = arith.constant 13 : index
    %c0_66 = arith.constant 0 : index
    %227 = vector.load %arg4[%c13, %c0_66] : memref<32x128xf32, #tpu.memory_space<vmem>>, vector<1x32xf32>
    %c14 = arith.constant 14 : index
    %c0_67 = arith.constant 0 : index
    %228 = vector.load %arg4[%c14, %c0_67] : memref<32x128xf32, #tpu.memory_space<vmem>>, vector<1x32xf32>
    %229 = vector.extract_strided_slice %223 {offsets = [0, 0], sizes = [32, 16], strides = [1, 1]} : vector<32x32xf32> to vector<32x16xf32>
    %230 = arith.truncf %229 : vector<32x16xf32> to vector<32x16xbf16>
    %cst_68 = arith.constant dense<0.000000e+00> : vector<16x16xf32>
    %231 = tpu.matmul %222, %230, %cst_68 {dimension_numbers = #tpu.dot_dimension_numbers<[1], [0], [0], [1], [0, 0, 1, 1], [], []>} : vector<16x32xbf16>, vector<32x16xbf16>, vector<16x16xf32> -> vector<16x16xf32>
    %232 = vector.extract_strided_slice %226 {offsets = [0, 0], sizes = [1, 16], strides = [1, 1]} : vector<1x32xf32> to vector<1x16xf32>
    %233 = vector.broadcast %232 : vector<1x16xf32> to vector<16x16xf32>
    %234 = arith.addf %231, %233 : vector<16x16xf32>
    %235 = vector.shape_cast %234 : vector<16x16xf32> to vector<2x8x16xf32>
    %236 = vector.extract_strided_slice %224 {offsets = [0, 0], sizes = [32, 16], strides = [1, 1]} : vector<32x32xf32> to vector<32x16xf32>
    %237 = arith.truncf %236 : vector<32x16xf32> to vector<32x16xbf16>
    %cst_69 = arith.constant dense<0.000000e+00> : vector<16x16xf32>
    %238 = tpu.matmul %222, %237, %cst_69 {dimension_numbers = #tpu.dot_dimension_numbers<[1], [0], [0], [1], [0, 0, 1, 1], [], []>} : vector<16x32xbf16>, vector<32x16xbf16>, vector<16x16xf32> -> vector<16x16xf32>
    %239 = vector.extract_strided_slice %227 {offsets = [0, 0], sizes = [1, 16], strides = [1, 1]} : vector<1x32xf32> to vector<1x16xf32>
    %240 = vector.broadcast %239 : vector<1x16xf32> to vector<16x16xf32>
    %241 = arith.addf %238, %240 : vector<16x16xf32>
    %242 = vector.shape_cast %241 : vector<16x16xf32> to vector<2x8x16xf32>
    %243 = vector.extract_strided_slice %225 {offsets = [0, 0], sizes = [32, 16], strides = [1, 1]} : vector<32x32xf32> to vector<32x16xf32>
    %244 = arith.truncf %243 : vector<32x16xf32> to vector<32x16xbf16>
    %cst_70 = arith.constant dense<0.000000e+00> : vector<16x16xf32>
    %245 = tpu.matmul %222, %244, %cst_70 {dimension_numbers = #tpu.dot_dimension_numbers<[1], [0], [0], [1], [0, 0, 1, 1], [], []>} : vector<16x32xbf16>, vector<32x16xbf16>, vector<16x16xf32> -> vector<16x16xf32>
    %246 = vector.extract_strided_slice %228 {offsets = [0, 0], sizes = [1, 16], strides = [1, 1]} : vector<1x32xf32> to vector<1x16xf32>
    %247 = vector.broadcast %246 : vector<1x16xf32> to vector<16x16xf32>
    %248 = arith.addf %245, %247 : vector<16x16xf32>
    %249 = vector.shape_cast %248 : vector<16x16xf32> to vector<2x8x16xf32>
    %250 = vector.extract_strided_slice %223 {offsets = [0, 16], sizes = [32, 16], strides = [1, 1]} : vector<32x32xf32> to vector<32x16xf32>
    %251 = arith.truncf %250 : vector<32x16xf32> to vector<32x16xbf16>
    %cst_71 = arith.constant dense<0.000000e+00> : vector<16x16xf32>
    %252 = tpu.matmul %222, %251, %cst_71 {dimension_numbers = #tpu.dot_dimension_numbers<[1], [0], [0], [1], [0, 0, 1, 1], [], []>} : vector<16x32xbf16>, vector<32x16xbf16>, vector<16x16xf32> -> vector<16x16xf32>
    %253 = vector.extract_strided_slice %226 {offsets = [0, 16], sizes = [1, 16], strides = [1, 1]} : vector<1x32xf32> to vector<1x16xf32>
    %254 = vector.broadcast %253 : vector<1x16xf32> to vector<16x16xf32>
    %255 = arith.addf %252, %254 : vector<16x16xf32>
    %256 = vector.shape_cast %255 : vector<16x16xf32> to vector<2x8x16xf32>
    %257 = vector.extract_strided_slice %224 {offsets = [0, 16], sizes = [32, 16], strides = [1, 1]} : vector<32x32xf32> to vector<32x16xf32>
    %258 = arith.truncf %257 : vector<32x16xf32> to vector<32x16xbf16>
    %cst_72 = arith.constant dense<0.000000e+00> : vector<16x16xf32>
    %259 = tpu.matmul %222, %258, %cst_72 {dimension_numbers = #tpu.dot_dimension_numbers<[1], [0], [0], [1], [0, 0, 1, 1], [], []>} : vector<16x32xbf16>, vector<32x16xbf16>, vector<16x16xf32> -> vector<16x16xf32>
    %260 = vector.extract_strided_slice %227 {offsets = [0, 16], sizes = [1, 16], strides = [1, 1]} : vector<1x32xf32> to vector<1x16xf32>
    %261 = vector.broadcast %260 : vector<1x16xf32> to vector<16x16xf32>
    %262 = arith.addf %259, %261 : vector<16x16xf32>
    %263 = vector.shape_cast %262 : vector<16x16xf32> to vector<2x8x16xf32>
    %264 = vector.extract_strided_slice %225 {offsets = [0, 16], sizes = [32, 16], strides = [1, 1]} : vector<32x32xf32> to vector<32x16xf32>
    %265 = arith.truncf %264 : vector<32x16xf32> to vector<32x16xbf16>
    %cst_73 = arith.constant dense<0.000000e+00> : vector<16x16xf32>
    %266 = tpu.matmul %222, %265, %cst_73 {dimension_numbers = #tpu.dot_dimension_numbers<[1], [0], [0], [1], [0, 0, 1, 1], [], []>} : vector<16x32xbf16>, vector<32x16xbf16>, vector<16x16xf32> -> vector<16x16xf32>
    %267 = vector.extract_strided_slice %228 {offsets = [0, 16], sizes = [1, 16], strides = [1, 1]} : vector<1x32xf32> to vector<1x16xf32>
    %268 = vector.broadcast %267 : vector<1x16xf32> to vector<16x16xf32>
    %269 = arith.addf %266, %268 : vector<16x16xf32>
    %270 = vector.shape_cast %269 : vector<16x16xf32> to vector<2x8x16xf32>
    %271 = vector.shape_cast %235 : vector<2x8x16xf32> to vector<1x2x8x16xf32>
    %272 = vector.shape_cast %256 : vector<2x8x16xf32> to vector<1x2x8x16xf32>
    %273 = tpu.concatenate %271, %272 in 0 : vector<1x2x8x16xf32>, vector<1x2x8x16xf32> -> vector<2x2x8x16xf32>
    %274 = vector.shape_cast %273 : vector<2x2x8x16xf32> to vector<4x8x16xf32>
    %275 = vector.shape_cast %242 : vector<2x8x16xf32> to vector<1x2x8x16xf32>
    %276 = vector.shape_cast %263 : vector<2x8x16xf32> to vector<1x2x8x16xf32>
    %277 = tpu.concatenate %275, %276 in 0 : vector<1x2x8x16xf32>, vector<1x2x8x16xf32> -> vector<2x2x8x16xf32>
    %278 = vector.shape_cast %277 : vector<2x2x8x16xf32> to vector<4x8x16xf32>
    %279 = vector.shape_cast %249 : vector<2x8x16xf32> to vector<1x2x8x16xf32>
    %280 = vector.shape_cast %270 : vector<2x8x16xf32> to vector<1x2x8x16xf32>
    %281 = tpu.concatenate %279, %280 in 0 : vector<1x2x8x16xf32>, vector<1x2x8x16xf32> -> vector<2x2x8x16xf32>
    %282 = vector.shape_cast %281 : vector<2x2x8x16xf32> to vector<4x8x16xf32>
    %283 = arith.truncf %274 : vector<4x8x16xf32> to vector<4x8x16xbf16>
    %284 = arith.truncf %278 : vector<4x8x16xf32> to vector<4x8x16xbf16>
    %cst_74 = arith.constant dense<0.000000e+00> : vector<4x8x8xf32>
    %285 = tpu.matmul %283, %284, %cst_74 {dimension_numbers = #tpu.dot_dimension_numbers<[2], [2], [1], [1], [0, 0, 0, 1, 1, 1], [0], [0]>} : vector<4x8x16xbf16>, vector<4x8x16xbf16>, vector<4x8x8xf32> -> vector<4x8x8xf32>
    %cst_75 = arith.constant 2.500000e-01 : f32
    %286 = vector.broadcast %cst_75 : f32 to vector<4x8x8xf32>
    %287 = arith.mulf %285, %286 : vector<4x8x8xf32>
    %288 = vector.broadcast %51 : vector<4x1x8xf32> to vector<4x8x8xf32>
    %289 = arith.addf %287, %288 : vector<4x8x8xf32>
    %cst_76 = arith.constant dense<0xFF800000> : vector<4x8xf32>
    %290 = vector.multi_reduction <maximumf>, %289, %cst_76 [2] : vector<4x8x8xf32> to vector<4x8xf32>
    %291 = vector.shape_cast %290 : vector<4x8xf32> to vector<4x8x1xf32>
    %292 = vector.broadcast %291 : vector<4x8x1xf32> to vector<4x8x8xf32>
    %293 = arith.subf %289, %292 : vector<4x8x8xf32>
    %294 = math.exp %293 : vector<4x8x8xf32>
    %cst_77 = arith.constant dense<0.000000e+00> : vector<4x8xf32>
    %295 = vector.multi_reduction <add>, %294, %cst_77 [2] : vector<4x8x8xf32> to vector<4x8xf32>
    %296 = vector.shape_cast %295 : vector<4x8xf32> to vector<4x8x1xf32>
    %297 = vector.broadcast %296 : vector<4x8x1xf32> to vector<4x8x8xf32>
    %298 = arith.divf %294, %297 : vector<4x8x8xf32>
    %299 = arith.truncf %298 : vector<4x8x8xf32> to vector<4x8x8xbf16>
    %300 = arith.truncf %282 : vector<4x8x16xf32> to vector<4x8x16xbf16>
    %cst_78 = arith.constant dense<0.000000e+00> : vector<4x8x16xf32>
    %301 = tpu.matmul %299, %300, %cst_78 {dimension_numbers = #tpu.dot_dimension_numbers<[2], [1], [1], [2], [0, 0, 0, 1, 1, 2], [0], [0]>} : vector<4x8x8xbf16>, vector<4x8x16xbf16>, vector<4x8x16xf32> -> vector<4x8x16xf32>
    %c448 = arith.constant 448 : index
    %c0_79 = arith.constant 0 : index
    %302 = vector.load %arg3[%c448, %c0_79] : memref<608x128xf32, #tpu.memory_space<vmem>>, vector<32x32xf32>
    %c15 = arith.constant 15 : index
    %c0_80 = arith.constant 0 : index
    %303 = vector.load %arg4[%c15, %c0_80] : memref<32x128xf32, #tpu.memory_space<vmem>>, vector<1x32xf32>
    %304 = vector.extract_strided_slice %301 {offsets = [0, 0, 0], sizes = [2, 8, 16], strides = [1, 1, 1]} : vector<4x8x16xf32> to vector<2x8x16xf32>
    %305 = vector.shape_cast %304 : vector<2x8x16xf32> to vector<16x16xf32>
    %306 = vector.extract_strided_slice %302 {offsets = [0, 0], sizes = [16, 32], strides = [1, 1]} : vector<32x32xf32> to vector<16x32xf32>
    %307 = arith.truncf %305 : vector<16x16xf32> to vector<16x16xbf16>
    %308 = arith.truncf %306 : vector<16x32xf32> to vector<16x32xbf16>
    %cst_81 = arith.constant dense<0.000000e+00> : vector<16x32xf32>
    %309 = tpu.matmul %307, %308, %cst_81 {dimension_numbers = #tpu.dot_dimension_numbers<[1], [0], [0], [1], [0, 0, 1, 1], [], []>} : vector<16x16xbf16>, vector<16x32xbf16>, vector<16x32xf32> -> vector<16x32xf32>
    %310 = vector.broadcast %303 : vector<1x32xf32> to vector<16x32xf32>
    %311 = arith.addf %310, %309 : vector<16x32xf32>
    %312 = vector.extract_strided_slice %301 {offsets = [2, 0, 0], sizes = [2, 8, 16], strides = [1, 1, 1]} : vector<4x8x16xf32> to vector<2x8x16xf32>
    %313 = vector.shape_cast %312 : vector<2x8x16xf32> to vector<16x16xf32>
    %314 = vector.extract_strided_slice %302 {offsets = [16, 0], sizes = [16, 32], strides = [1, 1]} : vector<32x32xf32> to vector<16x32xf32>
    %315 = arith.truncf %313 : vector<16x16xf32> to vector<16x16xbf16>
    %316 = arith.truncf %314 : vector<16x32xf32> to vector<16x32xbf16>
    %cst_82 = arith.constant dense<0.000000e+00> : vector<16x32xf32>
    %317 = tpu.matmul %315, %316, %cst_82 {dimension_numbers = #tpu.dot_dimension_numbers<[1], [0], [0], [1], [0, 0, 1, 1], [], []>} : vector<16x16xbf16>, vector<16x32xbf16>, vector<16x32xf32> -> vector<16x32xf32>
    %318 = arith.addf %311, %317 : vector<16x32xf32>
    %319 = arith.addf %318, %221 : vector<16x32xf32>
    %c16 = arith.constant 16 : index
    %c0_83 = arith.constant 0 : index
    %320 = vector.load %arg4[%c16, %c0_83] : memref<32x128xf32, #tpu.memory_space<vmem>>, vector<1x32xf32>
    %c17 = arith.constant 17 : index
    %c0_84 = arith.constant 0 : index
    %321 = vector.load %arg4[%c17, %c0_84] : memref<32x128xf32, #tpu.memory_space<vmem>>, vector<1x32xf32>
    %cst_85 = arith.constant dense<0.000000e+00> : vector<16xf32>
    %322 = vector.multi_reduction <add>, %319, %cst_85 [1] : vector<16x32xf32> to vector<16xf32>
    %323 = vector.shape_cast %322 : vector<16xf32> to vector<16x1xf32>
    %cst_86 = arith.constant 3.200000e+01 : f32
    %324 = vector.broadcast %cst_86 : f32 to vector<16x1xf32>
    %325 = arith.divf %323, %324 : vector<16x1xf32>
    %326 = vector.broadcast %325 : vector<16x1xf32> to vector<16x32xf32>
    %327 = arith.subf %319, %326 : vector<16x32xf32>
    %328 = arith.mulf %327, %327 : vector<16x32xf32>
    %cst_87 = arith.constant dense<0.000000e+00> : vector<16xf32>
    %329 = vector.multi_reduction <add>, %328, %cst_87 [1] : vector<16x32xf32> to vector<16xf32>
    %330 = vector.shape_cast %329 : vector<16xf32> to vector<16x1xf32>
    %cst_88 = arith.constant 3.200000e+01 : f32
    %331 = vector.broadcast %cst_88 : f32 to vector<16x1xf32>
    %332 = arith.divf %330, %331 : vector<16x1xf32>
    %cst_89 = arith.constant 9.99999996E-13 : f32
    %333 = vector.broadcast %cst_89 : f32 to vector<16x1xf32>
    %334 = arith.addf %332, %333 : vector<16x1xf32>
    %335 = math.rsqrt %334 : vector<16x1xf32>
    %336 = vector.broadcast %335 : vector<16x1xf32> to vector<16x32xf32>
    %337 = arith.mulf %327, %336 : vector<16x32xf32>
    %338 = vector.broadcast %320 : vector<1x32xf32> to vector<16x32xf32>
    %339 = arith.mulf %337, %338 : vector<16x32xf32>
    %340 = vector.broadcast %321 : vector<1x32xf32> to vector<16x32xf32>
    %341 = arith.addf %339, %340 : vector<16x32xf32>
    %c480 = arith.constant 480 : index
    %c0_90 = arith.constant 0 : index
    %342 = vector.load %arg3[%c480, %c0_90] : memref<608x128xf32, #tpu.memory_space<vmem>>, vector<32x64xf32>
    %c18 = arith.constant 18 : index
    %c0_91 = arith.constant 0 : index
    %343 = vector.load %arg4[%c18, %c0_91] : memref<32x128xf32, #tpu.memory_space<vmem>>, vector<1x64xf32>
    %344 = arith.truncf %341 : vector<16x32xf32> to vector<16x32xbf16>
    %345 = arith.truncf %342 : vector<32x64xf32> to vector<32x64xbf16>
    %cst_92 = arith.constant dense<0.000000e+00> : vector<16x64xf32>
    %346 = tpu.matmul %344, %345, %cst_92 {dimension_numbers = #tpu.dot_dimension_numbers<[1], [0], [0], [1], [0, 0, 1, 1], [], []>} : vector<16x32xbf16>, vector<32x64xbf16>, vector<16x64xf32> -> vector<16x64xf32>
    %347 = vector.broadcast %343 : vector<1x64xf32> to vector<16x64xf32>
    %348 = arith.addf %346, %347 : vector<16x64xf32>
    %cst_93 = arith.constant 5.000000e-01 : f32
    %349 = vector.broadcast %cst_93 : f32 to vector<16x64xf32>
    %350 = arith.mulf %349, %348 : vector<16x64xf32>
    %cst_94 = arith.constant 4.471500e-02 : f32
    %351 = vector.broadcast %cst_94 : f32 to vector<16x64xf32>
    %352 = arith.mulf %351, %348 : vector<16x64xf32>
    %353 = arith.mulf %352, %348 : vector<16x64xf32>
    %354 = arith.mulf %353, %348 : vector<16x64xf32>
    %355 = arith.addf %348, %354 : vector<16x64xf32>
    %cst_95 = arith.constant 0.797884583 : f32
    %356 = vector.broadcast %cst_95 : f32 to vector<16x64xf32>
    %357 = arith.mulf %356, %355 : vector<16x64xf32>
    %358 = math.tanh %357 : vector<16x64xf32>
    %cst_96 = arith.constant 1.000000e+00 : f32
    %359 = vector.broadcast %cst_96 : f32 to vector<16x64xf32>
    %360 = arith.addf %359, %358 : vector<16x64xf32>
    %361 = arith.mulf %350, %360 : vector<16x64xf32>
    %c512 = arith.constant 512 : index
    %c0_97 = arith.constant 0 : index
    %362 = vector.load %arg3[%c512, %c0_97] : memref<608x128xf32, #tpu.memory_space<vmem>>, vector<64x32xf32>
    %c19 = arith.constant 19 : index
    %c0_98 = arith.constant 0 : index
    %363 = vector.load %arg4[%c19, %c0_98] : memref<32x128xf32, #tpu.memory_space<vmem>>, vector<1x32xf32>
    %364 = arith.truncf %361 : vector<16x64xf32> to vector<16x64xbf16>
    %365 = arith.truncf %362 : vector<64x32xf32> to vector<64x32xbf16>
    %cst_99 = arith.constant dense<0.000000e+00> : vector<16x32xf32>
    %366 = tpu.matmul %364, %365, %cst_99 {dimension_numbers = #tpu.dot_dimension_numbers<[1], [0], [0], [1], [0, 0, 1, 1], [], []>} : vector<16x64xbf16>, vector<64x32xbf16>, vector<16x32xf32> -> vector<16x32xf32>
    %367 = vector.broadcast %363 : vector<1x32xf32> to vector<16x32xf32>
    %368 = arith.addf %366, %367 : vector<16x32xf32>
    %369 = arith.addf %368, %341 : vector<16x32xf32>
    %c20 = arith.constant 20 : index
    %c0_100 = arith.constant 0 : index
    %370 = vector.load %arg4[%c20, %c0_100] : memref<32x128xf32, #tpu.memory_space<vmem>>, vector<1x32xf32>
    %c21 = arith.constant 21 : index
    %c0_101 = arith.constant 0 : index
    %371 = vector.load %arg4[%c21, %c0_101] : memref<32x128xf32, #tpu.memory_space<vmem>>, vector<1x32xf32>
    %cst_102 = arith.constant dense<0.000000e+00> : vector<16xf32>
    %372 = vector.multi_reduction <add>, %369, %cst_102 [1] : vector<16x32xf32> to vector<16xf32>
    %373 = vector.shape_cast %372 : vector<16xf32> to vector<16x1xf32>
    %cst_103 = arith.constant 3.200000e+01 : f32
    %374 = vector.broadcast %cst_103 : f32 to vector<16x1xf32>
    %375 = arith.divf %373, %374 : vector<16x1xf32>
    %376 = vector.broadcast %375 : vector<16x1xf32> to vector<16x32xf32>
    %377 = arith.subf %369, %376 : vector<16x32xf32>
    %378 = arith.mulf %377, %377 : vector<16x32xf32>
    %cst_104 = arith.constant dense<0.000000e+00> : vector<16xf32>
    %379 = vector.multi_reduction <add>, %378, %cst_104 [1] : vector<16x32xf32> to vector<16xf32>
    %380 = vector.shape_cast %379 : vector<16xf32> to vector<16x1xf32>
    %cst_105 = arith.constant 3.200000e+01 : f32
    %381 = vector.broadcast %cst_105 : f32 to vector<16x1xf32>
    %382 = arith.divf %380, %381 : vector<16x1xf32>
    %cst_106 = arith.constant 9.99999996E-13 : f32
    %383 = vector.broadcast %cst_106 : f32 to vector<16x1xf32>
    %384 = arith.addf %382, %383 : vector<16x1xf32>
    %385 = math.rsqrt %384 : vector<16x1xf32>
    %386 = vector.broadcast %385 : vector<16x1xf32> to vector<16x32xf32>
    %387 = arith.mulf %377, %386 : vector<16x32xf32>
    %388 = vector.broadcast %370 : vector<1x32xf32> to vector<16x32xf32>
    %389 = arith.mulf %387, %388 : vector<16x32xf32>
    %390 = vector.broadcast %371 : vector<1x32xf32> to vector<16x32xf32>
    %391 = arith.addf %389, %390 : vector<16x32xf32>
    %392 = vector.shape_cast %391 : vector<16x32xf32> to vector<2x8x32xf32>
    %393 = vector.extract_strided_slice %392 {offsets = [0, 0, 0], sizes = [2, 1, 32], strides = [1, 1, 1]} : vector<2x8x32xf32> to vector<2x1x32xf32>
    %394 = vector.shape_cast %393 : vector<2x1x32xf32> to vector<2x32xf32>
    %c576 = arith.constant 576 : index
    %c0_107 = arith.constant 0 : index
    %395 = vector.load %arg3[%c576, %c0_107] : memref<608x128xf32, #tpu.memory_space<vmem>>, vector<32x32xf32>
    %c22 = arith.constant 22 : index
    %c0_108 = arith.constant 0 : index
    %396 = vector.load %arg4[%c22, %c0_108] : memref<32x128xf32, #tpu.memory_space<vmem>>, vector<1x32xf32>
    %397 = arith.truncf %394 : vector<2x32xf32> to vector<2x32xbf16>
    %398 = arith.truncf %395 : vector<32x32xf32> to vector<32x32xbf16>
    %cst_109 = arith.constant dense<0.000000e+00> : vector<2x32xf32>
    %399 = tpu.matmul %397, %398, %cst_109 {dimension_numbers = #tpu.dot_dimension_numbers<[1], [0], [0], [1], [0, 0, 1, 1], [], []>} : vector<2x32xbf16>, vector<32x32xbf16>, vector<2x32xf32> -> vector<2x32xf32>
    %400 = vector.broadcast %396 : vector<1x32xf32> to vector<2x32xf32>
    %401 = arith.addf %399, %400 : vector<2x32xf32>
    %402 = math.tanh %401 : vector<2x32xf32>
    %c23 = arith.constant 23 : index
    %c0_110 = arith.constant 0 : index
    %403 = vector.load %arg4[%c23, %c0_110] : memref<32x128xf32, #tpu.memory_space<vmem>>, vector<1x32xf32>
    %404 = vector.broadcast %403 : vector<1x32xf32> to vector<2x32xf32>
    %405 = arith.mulf %402, %404 : vector<2x32xf32>
    %cst_111 = arith.constant dense<0.000000e+00> : vector<2xf32>
    %406 = vector.multi_reduction <add>, %405, %cst_111 [1] : vector<2x32xf32> to vector<2xf32>
    %407 = vector.shape_cast %406 : vector<2xf32> to vector<2x1xf32>
    %c24 = arith.constant 24 : index
    %c0_112 = arith.constant 0 : index
    %408 = vector.load %arg4[%c24, %c0_112] : memref<32x128xf32, #tpu.memory_space<vmem>>, vector<1x1xf32>
    %409 = vector.broadcast %408 : vector<1x1xf32> to vector<2x1xf32>
    %410 = arith.addf %407, %409 : vector<2x1xf32>
    %cst_113 = arith.constant 5.000000e-01 : f32
    %411 = vector.broadcast %cst_113 : f32 to vector<2x1xf32>
    %412 = arith.mulf %411, %410 : vector<2x1xf32>
    %413 = math.tanh %412 : vector<2x1xf32>
    %cst_114 = arith.constant 1.000000e+00 : f32
    %414 = vector.broadcast %cst_114 : f32 to vector<2x1xf32>
    %415 = arith.addf %413, %414 : vector<2x1xf32>
    %cst_115 = arith.constant 5.000000e-01 : f32
    %416 = vector.broadcast %cst_115 : f32 to vector<2x1xf32>
    %417 = arith.mulf %416, %415 : vector<2x1xf32>
    %c0_116 = arith.constant 0 : index
    %c0_117 = arith.constant 0 : index
    %418 = vector.load %arg5[%c0_116, %c0_117] : memref<2x1xf32, #tpu.memory_space<vmem>>, vector<2x1xf32>
    tpu.vector_store %arg5[%c0_116, %c0_117], %417 {strides = array<i32>} : memref<2x1xf32, #tpu.memory_space<vmem>>, vector<2x1xf32>,
    return
  }
  func.func @transform_0(%arg0: i32) -> (i32, i32) {
    %c0_i32 = arith.constant 0 : i32
    %c0_i32_0 = arith.constant 0 : i32
    return %arg0, %c0_i32 : i32, i32
  }
  func.func @transform_1(%arg0: i32) -> (i32, i32) {
    %c0_i32 = arith.constant 0 : i32
    %c0_i32_0 = arith.constant 0 : i32
    return %arg0, %c0_i32 : i32, i32
  }
  func.func @transform_2(%arg0: i32) -> (i32, i32) {
    %c0_i32 = arith.constant 0 : i32
    %c0_i32_0 = arith.constant 0 : i32
    %c0_i32_1 = arith.constant 0 : i32
    return %c0_i32, %c0_i32_0 : i32, i32
  }
  func.func @transform_3(%arg0: i32) -> (i32, i32) {
    %c0_i32 = arith.constant 0 : i32
    %c0_i32_0 = arith.constant 0 : i32
    %c0_i32_1 = arith.constant 0 : i32
    return %c0_i32, %c0_i32_0 : i32, i32
  }
  func.func @transform_4(%arg0: i32) -> (i32, i32) {
    %c0_i32 = arith.constant 0 : i32
    %c0_i32_0 = arith.constant 0 : i32
    return %arg0, %c0_i32 : i32, i32
  }
}

</mosaic_0001>

<bundles_post_ra>
// kernel: model_forward.1
= control target key start
LH: loop header
LB: loop body
LE: loop exit
PB: predicated region body
PF: predicated region fallthrough
CT: control target
= control target key end

     0   :  { %9 = vsyncpa [#allocation3], 0  ;;  %s3509_s0 = inlined_call_operand.vmem [shape: s32[2,8], index: 0, kind: input, shape index: {}]   ;;  %s3510_s1 = inlined_call_operand.vmem [shape: s32[2,8], index: 1, kind: input, shape index: {}]   ;;  %s3511_s2 = inlined_call_operand.hbm [shape: f32[608,128], index: 2, kind: input, shape index: {}]   ;;  %s3512_s3 = inlined_call_operand.hbm [shape: f32[32,128], index: 3, kind: input, shape index: {}]   ;;  %s3513_s4 = inlined_call_operand.vmem [shape: f32[2,1], index: 4, kind: output, shape index: {}]  }
   0x1   :  { %10 = vsyncpa [#allocation5], 0  ;;  %s3124_s15 = smov [#allocation2]   ;;  %s3076_s19 = scalar_lea.hbm %s3511_s2, 9728 }
   0x2   :  { %s20_s16 = sshll.u32 %s3124_s15, 4  ;;  %p3077_p0 = scmp.ne.s32.totalorder %s3511_s2, %s3076_s19  ;;  %s21_s16 = int_to_ptr.vmem [resolvable:$true] %s20_s16 }
   0x3   :  { %p3080_p1 = scmp.lt.u32.totalorder %s3076_s19, %s3511_s2 }
   0x5   :  { %p3082_p2 = pnand %p3080_p1, %p3077_p0 }
   0x7   :  { %3085 = shalt.err (!%p3082_p2)
}
   0x8   :  { %s3086_s24 = scalar_lea.vmem %s21_s16, 9728  ;;  %p3091_p4 = scmp.lt.s32.totalorder %s21_s16, %s21_s16 }
   0x9   :  { %p3087_p3 = scmp.ne.s32.totalorder %s21_s16, %s3086_s24  ;;  %p3092_p5 = scmp.lt.s32.totalorder %s3086_s24, %s3086_s24 }
   0xb   :  { %p3093_p6 = por %p3092_p5, %p3091_p4 }
   0xd   :  { %p3094_p7 = pnand %p3093_p6, %p3087_p3 }
   0xf   :  { %3097 = shalt.err (!%p3094_p7)
}
  0x10   :  { %s3125_s25 = smov 128   ;;  %s3126_s26 = smov 8  }
  0x11   :  { %26 = dma.hbm_to_vmem [thread:$0]  %s3511_s2, 9728, %s21_s16, [#allocation3], %s3125_s25, %s3125_s25, %s3126_s26  }
  0x12   :  { %s3127_s29 = smov [#allocation4]   ;;  %s3098_s7 = scalar_lea.hbm %s3512_s3, 512 }
  0x13   :  { %s32_s30 = sshll.u32 %s3127_s29, 4  ;;  %p3099_p8 = scmp.ne.s32.totalorder %s3512_s3, %s3098_s7  ;;  %s33_s30 = int_to_ptr.vmem [resolvable:$true] %s32_s30 }
  0x14   :  { %p3102_p9 = scmp.lt.u32.totalorder %s3098_s7, %s3512_s3 }
  0x16   :  { %p3104_p10 = pnand %p3102_p9, %p3099_p8 }
  0x18   :  { %3107 = shalt.err (!%p3104_p10)
}
  0x19   :  { %s3108_s12 = scalar_lea.vmem %s33_s30, 512  ;;  %p3113_p12 = scmp.lt.s32.totalorder %s33_s30, %s33_s30 }
  0x1a   :  { %p3109_p11 = scmp.ne.s32.totalorder %s33_s30, %s3108_s12  ;;  %p3114_p13 = scmp.lt.s32.totalorder %s3108_s12, %s3108_s12 }
  0x1c   :  { %p3115_p0 = por %p3114_p13, %p3113_p12 }
  0x1e   :  { %p3116_p1 = pnand %p3115_p0, %p3109_p11 }
  0x20   :  { %3119 = shalt.err (!%p3116_p1)
}
  0x21   :  { %38 = dma.hbm_to_vmem [thread:$0]  %s3512_s3, 512, %s33_s30, [#allocation5], %s3125_s25, %s3125_s25, %s3126_s26  }
  0x22   :  { %3120 = dma.done.wait [#allocation3], 9728  }
  0x23   :  { %3121 = vsyncadd [#allocation3], 4294957568 }
  0x24   :  { %3122 = dma.done.wait [#allocation5], 512  }
  0x25   :  { %3123 = vsyncadd [#allocation5], 4294966784  ;;  %v47_v0 = vlaneseq  ;;  %v3128_v1 = vmov 0.0   ;;  %v3129_v3 = vmov 1966171168   ;;  %v69_v10 = vld [vmem:[#allocation2] sm:$0xff] }
  0x26   :  { %2716 = vmatprep.subr.bf16.mxu1 %v3128_v1  ;;  %v222_v4 = vunpack.c.l.s4 %v3129_v3  ;;  %v46_v8 = vld [vmem:[%s3509_s0] sm:$0x3]  ;;  %v70_v13 = vld [vmem:[#allocation2 + $0x8] sm:$0xff]  ;;  %v71_v14 = vld [vmem:[#allocation2 + $0x10] sm:$0xff]  ;;  %vm82_vm0 = vcmask 850944   ;;  %vm176_vm3 = vcmask 261120  }
  0x27   :  { %v48_v2 = vshrl.u32 %v47_v0, 7  ;;  %v216_v9 = vld [vmem:[%s3510_s1] sm:$0x3]  ;;  %v72_v15 = vld [vmem:[#allocation2 + $0x18] sm:$0xff]  ;;  %v2980_v16 = vpack.c.bf16 %v70_v13, %v69_v10  ;;  %v74_v22 = vld [vmem:[#allocation2 + $0x28] sm:$0xff]  ;;  %v62_v41 = vand.u32 127, %v47_v0 }
  0x28   :  { %v223_v6 = vunpack.c.0.s8 %v222_v4  ;;  %v217_v12 = vcvt.s32.f32 %v216_v9  ;;  %v2984_v17 = vpack.c.bf16 %v72_v15, %v71_v14  ;;  %v73_v21 = vld [vmem:[#allocation2 + $0x20] sm:$0xff]  ;;  %v75_v26 = vld [vmem:[#allocation2 + $0x30] sm:$0xff]  ;;  %v76_v27 = vld [vmem:[#allocation2 + $0x38] sm:$0xff]  ;;  %s3130_s0 = smov 112   ;;  %vm3131_vm4 = vmmov 0  }
  0x29   :  { %v49_v5 = vsub.s32 0, %v48_v2  ;;  %v56_v7 = vsub.s32 1, %v48_v2  ;;  %2981 = vmatprep.subr.bf16.mxu0 %v2980_v16  ;;  %v2988_v24 = vpack.c.bf16 %v74_v22, %v73_v21  ;;  %v2992_v30 = vpack.c.bf16 %v76_v27, %v75_v26  ;;  %v77_v33 = vld [vmem:[#allocation2 + $0x40] sm:$0xff]  ;;  %v78_v34 = vld [vmem:[#allocation2 + $0x48] sm:$0xff]  ;;  %v79_v37 = vld [vmem:[#allocation2 + $0x50] sm:$0xff]  ;;  %2720 = vmatprep.mubr.msk.bf16.mxu1 %vm3131_vm4, %v3128_v1 }
  0x2a   :  { %v218_v18 = vsub.f32 1.0, %v217_v12  ;;  %v226_v19 = vsub.s32 %v223_v6, %v48_v2  ;;  %2983 = vmatpush3.bf16.msra.mxu0 %v2980_v16  ;;  %v2996_v36 = vpack.c.bf16 %v78_v34, %v77_v33  ;;  %v80_v38 = vld [vmem:[#allocation2 + $0x58] sm:$0xff]  ;;  %v81_v40 = vld [vmem:[#allocation2 + $0x60] sm:$0xff]  ;;  %v164_v46 = vld [vmem:[#allocation2 + $0x68] sm:$0xff]  ;;  %vm570_vm5 = vcmask 130048  }
  0x2b   :  { %v50_v11 = vrot.slane %v46_v8, %v49_v5  ;;  %v57_v20 = vrot.slane %v46_v8, %v56_v7  ;;  %2985 = vmatprep.subr.bf16.mxu0 %v2984_v17  ;;  %v3000_v39 = vpack.c.bf16 %v80_v38, %v79_v37  ;;  %v2514_v49 = vld [vmem:[#allocation2 + $0x78] ss:$0 sm:$0xff]  ;;  %v244_v56 = vld [vmem:[#allocation2 + $0x80] sm:$0xff]  ;;  %v245_v57 = vld [vmem:[#allocation2 + $0x88] sm:$0xff]  ;;  %vm829_vm6 = vcmask 1043456  }
  0x2c   :  { %v219_v23 = vmul.f32 -1e+09, %v218_v18  ;;  %v259_v58 = vpack.c.bf16 %v245_v57, %v244_v56  ;;  %v246_v59 = vld [vmem:[#allocation2 + $0x90] sm:$0xff]  ;;  %v247_v60 = vld [vmem:[#allocation2 + $0x98] sm:$0xff]  ;;  %v248_v9 = vld [vmem:[#allocation2 + $0xa0] sm:$0xff]  ;;  %vm773_vm7 = vcmask 64512  }
  0x2d   :  { %52 = vbcast.lane.b32.xlu0 %v50_v11, 256  ;;  %v260_v61 = vpack.c.bf16 %v247_v60, %v246_v59  ;;  %v249_v10 = vld [vmem:[#allocation2 + $0xa8] sm:$0xff]  ;;  %v252_v11 = vld [vmem:[#allocation2 + $0xc0] sm:$0xff]  ;;  %v250_v14 = vld [vmem:[#allocation2 + $0xb0] sm:$0xff]  ;;  %vm1250_vm8 = vcmask 523264   ;;  %vm2435_vm9 = vcmask 1041409  }
  0x2e   :  { %v227_v25 = vrot.slane %v219_v23, %v226_v19  ;;  %2987 = vmatpush3.bf16.msra.mxu0 %v2984_v17  ;;  %2717 = vmatpush3.bf16.msra.mxu1 %v259_v58  ;;  %v253_v12 = vld [vmem:[#allocation2 + $0xc8] sm:$0xff]  ;;  %v309_v13 = vpack.c.bf16 %v249_v10, %v248_v9  ;;  %v251_v15 = vld [vmem:[#allocation2 + $0xb8] sm:$0xff]  ;;  %v254_v18 = vld [vmem:[#allocation2 + $0xd0] sm:$0xff]  ;;  %vm2488_vm10 = vcmask 254976   ;;  %vm2502_vm11 = vcmask 1024  }
  0x2f   :  { %2989 = vmatprep.subr.bf16.mxu0 %v2988_v24  ;;  %2718 = vmatprep.subr.bf16.mxu1 %v3128_v1  ;;  %v356_v16 = vpack.c.bf16 %v253_v12, %v252_v11  ;;  %v310_v17 = vpack.c.bf16 %v251_v15, %v250_v14  ;;  %v3211_v21 = vld [vmem:[#allocation4 + $0x3] ss:$0 sm:$0xff]  ;;  %v3215_v22 = vld [vmem:[#allocation4 + $0x2] ss:$0 sm:$0xff]  ;;  %v2515_v34 = vld [vmem:[#allocation4] ss:$0 sm:$0xff] }
  0x30   :  { %v228_v28 = vcombine.high %v227_v25, %v227_v25  ;;  %v235_v29 = vrot.slane %v227_v25, %v226_v19  ;;  %v3261_v11 = vld [vmem:[#allocation4 + $0x4] ss:$0 sm:$0xff] }
  0x31   :  { %59 = vbcast.lane.b32.xlu0 %v57_v20, 256 }
  0x32   :  { %v242_v31 = vrot.slane %v228_v28, %v226_v19  ;;  %v3188_v32 = vrot.slane %v235_v29, %v49_v5  ;;  %2991 = vmatpush3.bf16.msra.mxu0 %v2988_v24  ;;  %2719 = vmatpush3.bf16.msra.mxu1 %v260_v61  ;;  %v255_v19 = vld [vmem:[#allocation2 + $0xd8] sm:$0xff] }
  0x33   :  { %2993 = vmatprep.subr.bf16.mxu0 %v2992_v30  ;;  %2724 = vmatprep.subr.bf16.mxu1 %v3128_v1  ;;  %v357_v20 = vpack.c.bf16 %v255_v19, %v254_v18 }
  0x34   :  { %v3190_v35 = vrot.slane %v242_v31, %v49_v5 }
  0x36   :  { %2995 = vmatpush3.bf16.msra.mxu0 %v2992_v30 }
  0x37   :  { %2997 = vmatprep.subr.bf16.mxu0 %v2996_v36 }
  0x3a   :  { %2999 = vmatpush3.bf16.msra.mxu0 %v2996_v36 }
  0x3b   :  { %3001 = vmatprep.subr.bf16.mxu0 %v3000_v39 }
  0x3e   :  { %3003 = vmatpush3.bf16.msra.mxu0 %v3000_v39  ;;  %v2516_v39 = vld [vmem:[#allocation4 + $0x1] ss:$0 sm:$0xff] }
  0x3f   :  { %2711 = vmatprep.subr.mxu0 %v81_v40 }
  0x42   :  { %2712 = vmatpush3.msra.mxu0 %v81_v40 }
  0x43   :  { %2748 = vmatprep.subr.bf16.mxu0 %v3128_v1 }
  0x9f   :  { %v53_v42 = vpop.permute.xlu0 %52 }
  0xa0   :  { %vm63_vm1 = vcmp.eq.s32.totalorder %v53_v42, %v62_v41 }
  0xa1   :  { %v2510_v43 = vsel %vm63_vm1, 1.0, %v3128_v1 }
  0xa2   :  { %2713 = vmatprep.mubr.msk.f32.mxu0 %vm82_vm0, %v2510_v43 }
  0xa3   :  { %v60_v44 = vpop.permute.xlu0 %59 }
  0xa4   :  { %vm64_vm2 = vcmp.eq.s32.totalorder %v60_v44, %v62_v41 }
  0xa5   :  { %v2511_v45 = vsel %vm64_vm2, 1.0, %v3128_v1 }
  0xa6   :  { %2714 = vmatmul.mubr.msk.f32.vlgmr.msra.gmra.mrb[0].mxu0 %vm82_vm0, %v2511_v45 }
  0xa7   :  { %2752 = vmatprep.mubr.msk.bf16.mxu0 %vm3131_vm4, %v3128_v1 }
 0x179   :  { %v2715_v47 = vpop.f32.mrb[0].mxu0 }
 0x17a   :  { %v155_v48 = vpop.f32.mrb[1].mxu0  ;;  %v167_v50 = vadd.f32 %v2715_v47, %v164_v46 }
 0x17b   :  { %v166_v51 = vadd.f32 %v164_v46, %v155_v48 }
 0x17c   :  { %v173_v54 = vadd.f32 %v2514_v49, %v167_v50 }
 0x17d   :  { %v172_v52 = vadd.f32 %v2514_v49, %v166_v51 }
 0x17e   :  { %v180_v55 = vsel %vm176_vm3, %v173_v54, 0.0 }
 0x17f   :  { %v177_v53 = vsel %vm176_vm3, %v172_v52, 0.0 }
 0x180   :  { %178 = vadd.xlane.f32.xlu1 %v177_v53 }
 0x184   :  { %181 = vadd.xlane.f32.xlu1 %v180_v55 }
 0x20d   :  { %v179_v62 = vpop.xlane.xlu1 %178 }
 0x20e   :  { %v184_v63 = vmul.f32 0.03125, %v179_v62 }
 0x210   :  { %v186_v0 = vsub.f32 %v172_v52, %v184_v63 }
 0x211   :  { %v182_v2 = vpop.xlane.xlu1 %181 }
 0x212   :  { %v185_v3 = vmul.f32 0.03125, %v182_v2  ;;  %v188_v4 = vmul.f32 %v186_v0, %v186_v0 }
 0x214   :  { %v187_v5 = vsub.f32 %v173_v54, %v185_v3  ;;  %v190_v6 = vsel %vm176_vm3, %v188_v4, 0.0 }
 0x215   :  { %191 = vadd.xlane.f32.xlu0 %v190_v6 }
 0x216   :  { %v189_v7 = vmul.f32 %v187_v5, %v187_v5 }
 0x218   :  { %v193_v8 = vsel %vm176_vm3, %v189_v7, 0.0 }
 0x219   :  { %194 = vadd.xlane.f32.xlu1 %v193_v8 }
 0x22a   :  { %458 = vrot.lane.b32.xlu1 %v309_v13, %s3130_s0 }
 0x22b   :  { %511 = vrot.lane.b32.xlu0 %v356_v16, %s3130_s0 }
 0x22e   :  { %460 = vrot.lane.b32.xlu1 %v310_v17, %s3130_s0 }
 0x232   :  { %405 = vrot.lane.b32.xlu1 %v259_v58, %s3130_s0 }
 0x236   :  { %407 = vrot.lane.b32.xlu1 %v260_v61, %s3130_s0 }
 0x23a   :  { %513 = vrot.lane.b32.xlu1 %v357_v20, %s3130_s0 }
 0x23e   :  { %465 = vrot.lane.b32.xlu1 %v3211_v21, %s3130_s0 }
 0x242   :  { %412 = vrot.lane.b32.xlu1 %v3215_v22, %s3130_s0 }
 0x2a2   :  { %v192_v23 = vpop.xlane.xlu0 %191 }
 0x2a3   :  { %v196_v24 = vmul.f32 0.03125, %v192_v23 }
 0x2a5   :  { %v198_v25 = vadd.f32 1e-12, %v196_v24 }
 0x2a6   :  { %v195_v26 = vpop.xlane.xlu1 %194  ;;  %v512_v46 = vpop.permute.xlu0 %511 }
 0x2a7   :  { %3012 = vrsqrt.f32 %v198_v25  ;;  %v197_v27 = vmul.f32 0.03125, %v195_v26 }
 0x2a9   :  { %v199_v28 = vadd.f32 1e-12, %v197_v27 }
 0x2aa   :  { %v459_v29 = vpop.permute.xlu1 %458 }
 0x2ab   :  { %3014 = vrsqrt.f32 %v199_v28  ;;  %2749 = vmatpush3.bf16.msra.mxu0 %v459_v29 }
 0x2ac   :  { %2750 = vmatprep.subr.bf16.mxu0 %v3128_v1 }
 0x2ae   :  { %v461_v30 = vpop.permute.xlu1 %460 }
 0x2af   :  { %2751 = vmatpush3.bf16.msra.mxu0 %v461_v30 }
 0x2b0   :  { %2764 = vmatprep.subr.bf16.mxu0 %v3128_v1 }
 0x2b1   :  { %v3013_v31 = vpop.eup %3012 }
 0x2b2   :  { %v202_v33 = vmul.f32 %v3013_v31, %v186_v0  ;;  %v406_v44 = vpop.permute.xlu1 %405 }
 0x2b4   :  { %v208_v37 = vmul.f32 %v2515_v34, %v202_v33 }
 0x2b5   :  { %v3015_v36 = vpop.eup %3014 }
 0x2b6   :  { %v203_v38 = vmul.f32 %v3015_v36, %v187_v5  ;;  %v3221_v41 = vadd.f32 %v2516_v39, %v208_v37  ;;  %v408_v45 = vpop.permute.xlu1 %407 }
 0x2b8   :  { %v209_v40 = vmul.f32 %v2515_v34, %v203_v38 }
 0x2ba   :  { %v3223_v42 = vadd.f32 %v2516_v39, %v209_v40  ;;  %v514_v47 = vpop.permute.xlu1 %513 }
 0x2bc   :  { %v243_v43 = vpack.c.bf16 %v3223_v42, %v3221_v41 }
 0x2be   :  { %2721 = vmatmul.mubr.msk.bf16.vlgmr.msra.gmra.mrb[0].mxu1 %vm176_vm3, %v243_v43  ;;  %2753 = vmatmul.mubr.msk.bf16.vlgmr.msra.gmra.mrb[4].mxu0 %vm176_vm3, %v243_v43  ;;  %v466_v59 = vpop.permute.xlu1 %465 }
 0x2bf   :  { %2725 = vmatpush3.bf16.msra.mxu1 %v309_v13  ;;  %2728 = vmatprep.mubr.msk.bf16.mxu1 %vm3131_vm4, %v3128_v1 }
 0x2c0   :  { %2726 = vmatprep.subr.bf16.mxu1 %v3128_v1  ;;  %2766 = vmatprep.mubr.msk.bf16.mxu0 %vm3131_vm4, %v3128_v1 }
 0x2c2   :  { %v413_v19 = vpop.permute.xlu1 %412 }
 0x2c3   :  { %2727 = vmatpush3.bf16.msra.mxu1 %v310_v17 }
 0x2c4   :  { %2732 = vmatprep.subr.bf16.mxu1 %v3128_v1 }
 0x2c6   :  { %2729 = vmatmul.mubr.msk.bf16.vlgmr.msra.gmra.mrb[4].mxu1 %vm176_vm3, %v243_v43 }
 0x2c7   :  { %2733 = vmatpush3.bf16.msra.mxu1 %v356_v16  ;;  %2736 = vmatprep.mubr.msk.bf16.mxu1 %vm3131_vm4, %v3128_v1 }
 0x2c8   :  { %2734 = vmatprep.subr.bf16.mxu1 %v3128_v1 }
 0x2cb   :  { %2735 = vmatpush3.bf16.msra.mxu1 %v357_v20 }
 0x2cc   :  { %2740 = vmatprep.subr.bf16.mxu1 %v3128_v1 }
 0x2ce   :  { %2737 = vmatmul.mubr.msk.bf16.vlgmr.msra.gmra.mrb[8].mxu1 %vm176_vm3, %v243_v43 }
 0x2cf   :  { %2741 = vmatpush3.bf16.msra.mxu1 %v406_v44  ;;  %2744 = vmatprep.mubr.msk.bf16.mxu1 %vm3131_vm4, %v3128_v1 }
 0x2d0   :  { %2742 = vmatprep.subr.bf16.mxu1 %v3128_v1 }
 0x2d3   :  { %2743 = vmatpush3.bf16.msra.mxu1 %v408_v45 }
 0x2d4   :  { %2756 = vmatprep.subr.bf16.mxu1 %v3128_v1 }
 0x2d6   :  { %2745 = vmatmul.mubr.msk.bf16.vlgmr.msra.gmra.mrb[12].mxu1 %vm176_vm3, %v243_v43 }
 0x2d7   :  { %2757 = vmatpush3.bf16.msra.mxu1 %v512_v46  ;;  %2760 = vmatprep.mubr.msk.bf16.mxu1 %vm3131_vm4, %v3128_v1 }
 0x2d8   :  { %2758 = vmatprep.subr.bf16.mxu1 %v3128_v1 }
 0x2db   :  { %2759 = vmatpush3.bf16.msra.mxu1 %v514_v47 }
 0x2dc   :  { %2770 = vmatprep.subr.bf16.mxu1 %v3128_v1 }
 0x2de   :  { %2761 = vmatmul.mubr.msk.bf16.vlgmr.msra.gmra.mrb[16].mxu1 %vm176_vm3, %v243_v43 }
 0x2df   :  { %2772 = vmatprep.mubr.msk.bf16.mxu1 %vm3131_vm4, %v3128_v1 }
 0x391   :  { %v302_v48 = vpop.f32.mrb[0].mxu1  ;;  %v502_v49 = vpop.f32.mrb[4].mxu0 }
 0x392   :  { %v2722_v50 = vpop.f32.mrb[1].mxu1  ;;  %v2754_v51 = vpop.f32.mrb[5].mxu0  ;;  %v503_v0 = vadd.f32 %v502_v49, %v466_v59  ;;  %v303_v4 = vadd.f32 %v3215_v22, %v302_v48 }
 0x393   :  { %v305_v52 = vpop.f32.mrb[2].mxu1  ;;  %v505_v53 = vpop.f32.mrb[6].mxu0 }
 0x394   :  { %v2723_v54 = vpop.f32.mrb[3].mxu1  ;;  %v2755_v55 = vpop.f32.mrb[7].mxu0  ;;  %v506_v5 = vadd.f32 %v505_v53, %v466_v59  ;;  %v568_v8 = vpack.c.bf16 %v503_v0, %v503_v0  ;;  %v306_v9 = vadd.f32 %v3215_v22, %v305_v52  ;;  %v562_v13 = vpack.c.bf16 %v303_v4, %v303_v4 }
 0x396   :  { %v569_v14 = vpack.c.bf16 %v506_v5, %v506_v5  ;;  %v563_v16 = vpack.c.bf16 %v306_v9, %v306_v9  ;;  %v667_v18 = vsel %vm570_vm5, %v568_v8, 0 }
 0x398   :  { %v713_v20 = vsel %vm570_vm5, %v569_v14, 0 }
 0x399   :  { %v349_v56 = vpop.f32.mrb[4].mxu1 }
 0x39a   :  { %v350_v57 = vadd.f32 %v3211_v21, %v349_v56  ;;  %v2730_v58 = vpop.f32.mrb[5].mxu1 }
 0x39b   :  { %v352_v60 = vpop.f32.mrb[6].mxu1 }
 0x39c   :  { %v566_v61 = vpack.c.bf16 %v350_v57, %v350_v57  ;;  %v353_v62 = vadd.f32 %v3211_v21, %v352_v60  ;;  %v2731_v63 = vpop.f32.mrb[7].mxu1 }
 0x39e   :  { %v575_v2 = vsel %vm570_vm5, %v566_v61, 0  ;;  %v567_v3 = vpack.c.bf16 %v353_v62, %v353_v62 }
 0x39f   :  { %2765 = vmatpush3.bf16.xpose.msra.mxu0 %v575_v2 }
 0x3a0   :  { %v621_v6 = vsel %vm570_vm5, %v567_v3, 0  ;;  %2776 = vmatprep.subr.bf16.mxu0 %v3128_v1 }
 0x3a1   :  { %v396_v7 = vpop.f32.mrb[8].mxu1  ;;  %2771 = vmatpush3.bf16.xpose.msra.mxu1 %v621_v6 }
 0x3a2   :  { %v2738_v10 = vpop.f32.mrb[9].mxu1  ;;  %2782 = vmatprep.subr.bf16.mxu1 %v3128_v1  ;;  %v397_v17 = vadd.f32 %v3261_v11, %v396_v7 }
 0x3a3   :  { %v399_v12 = vpop.f32.mrb[10].mxu1 }
 0x3a4   :  { %v2739_v15 = vpop.f32.mrb[11].mxu1  ;;  %v400_v21 = vadd.f32 %v3261_v11, %v399_v12  ;;  %v822_v23 = vpack.c.bf16 %v397_v17, %v397_v17 }
 0x3a6   :  { %2767 = vmatmul.mubr.msk.bf16.vlgmr.msra.gmra.mrb[8].mxu0 %vm570_vm5, %v562_v13  ;;  %v823_v27 = vpack.c.bf16 %v400_v21, %v400_v21  ;;  %v831_v31 = vsel %vm829_vm6, %v822_v23, 0 }
 0x3a7   :  { %2777 = vmatpush3.bf16.xpose.msra.mxu0 %v667_v18  ;;  %2778 = vmatprep.mubr.msk.bf16.mxu0 %vm3131_vm4, %v3128_v1 }
 0x3a8   :  { %2773 = vmatmul.mubr.msk.bf16.vlgmr.msra.gmra.mrb[20].mxu1 %vm570_vm5, %v563_v16  ;;  %2788 = vmatprep.subr.bf16.mxu0 %v3128_v1  ;;  %v877_v34 = vsel %vm829_vm6, %v823_v27, 0 }
 0x3a9   :  { %v449_v22 = vpop.f32.mrb[12].mxu1  ;;  %2783 = vmatpush3.bf16.xpose.msra.mxu1 %v713_v20  ;;  %2784 = vmatprep.mubr.msk.bf16.mxu1 %vm3131_vm4, %v3128_v1 }
 0x3aa   :  { %v450_v24 = vadd.f32 %v449_v22, %v413_v19  ;;  %v2746_v25 = vpop.f32.mrb[13].mxu1  ;;  %2794 = vmatprep.subr.bf16.mxu1 %v3128_v1 }
 0x3ab   :  { %v452_v26 = vpop.f32.mrb[14].mxu1 }
 0x3ac   :  { %v564_v28 = vpack.c.bf16 %v450_v24, %v450_v24  ;;  %v453_v29 = vadd.f32 %v452_v26, %v413_v19  ;;  %v2747_v30 = vpop.f32.mrb[15].mxu1 }
 0x3ae   :  { %v565_v33 = vpack.c.bf16 %v453_v29, %v453_v29  ;;  %2779 = vmatmul.mubr.msk.bf16.vlgmr.msra.gmra.mrb[12].mxu0 %vm570_vm5, %v564_v28 }
 0x3af   :  { %2789 = vmatpush3.bf16.msra.mxu0 %v831_v31  ;;  %2790 = vmatprep.mubr.msk.bf16.mxu0 %vm3131_vm4, %v3128_v1 }
 0x3b0   :  { %2785 = vmatmul.mubr.msk.bf16.vlgmr.msra.gmra.mrb[24].mxu1 %vm570_vm5, %v565_v33  ;;  %2800 = vmatprep.subr.bf16.mxu0 %v3128_v1 }
 0x3b1   :  { %v3282_v36 = vpop.f32.mrb[16].mxu1  ;;  %2795 = vmatpush3.bf16.msra.mxu1 %v877_v34  ;;  %2796 = vmatprep.mubr.msk.bf16.mxu1 %vm3131_vm4, %v3128_v1 }
 0x3b2   :  { %v2762_v37 = vpop.f32.mrb[17].mxu1  ;;  %2806 = vmatprep.subr.bf16.mxu1 %v3128_v1 }
 0x3b3   :  { %v3287_v38 = vpop.f32.mrb[18].mxu1 }
 0x3b4   :  { %v2763_v39 = vpop.f32.mrb[19].mxu1 }
 0x479   :  { %v611_v40 = vpop.f32.mrb[8].mxu0 }
 0x47a   :  { %v755_v43 = vmul.f32 0.25, %v611_v40  ;;  %v2768_v44 = vpop.f32.mrb[9].mxu0 }
 0x47b   :  { %v614_v45 = vpop.f32.mrb[10].mxu0  ;;  %v657_v46 = vpop.f32.mrb[20].mxu1 }
 0x47c   :  { %v756_v47 = vmul.f32 0.25, %v657_v46  ;;  %v2769_v48 = vpop.f32.mrb[11].mxu0  ;;  %v2774_v49 = vpop.f32.mrb[21].mxu1  ;;  %v769_v50 = vadd.f32 %v3188_v32, %v755_v43 }
 0x47d   :  { %v660_v51 = vpop.f32.mrb[22].mxu1 }
 0x47e   :  { %v2775_v52 = vpop.f32.mrb[23].mxu1  ;;  %v774_v53 = vsel %vm773_vm7, %v769_v50, -inf  ;;  %v770_v54 = vadd.f32 %v3190_v35, %v756_v47 }
 0x47f   :  { %775 = vmax.xlane.f32.xlu1 %v774_v53 }
 0x480   :  { %v777_v55 = vsel %vm773_vm7, %v770_v54, -inf }
 0x481   :  { %778 = vmax.xlane.f32.xlu0 %v777_v55  ;;  %v703_v56 = vpop.f32.mrb[12].mxu0  ;;  %v1012_v55 = vld [vmem:[#allocation2 + $0xe8] sm:$0xff] }
 0x482   :  { %v757_v57 = vmul.f32 0.25, %v703_v56  ;;  %v2780_v58 = vpop.f32.mrb[13].mxu0 }
 0x483   :  { %v706_v59 = vpop.f32.mrb[14].mxu0  ;;  %v749_v60 = vpop.f32.mrb[24].mxu1  ;;  %v1014_v58 = vld [vmem:[#allocation2 + $0xf8] sm:$0xff] }
 0x484   :  { %v758_v61 = vmul.f32 0.25, %v749_v60  ;;  %v2781_v62 = vpop.f32.mrb[15].mxu0  ;;  %v2786_v63 = vpop.f32.mrb[25].mxu1  ;;  %v771_v0 = vadd.f32 %v3188_v32, %v757_v57  ;;  %v1013_v57 = vld [vmem:[#allocation2 + $0xf0] sm:$0xff] }
 0x485   :  { %v752_v2 = vpop.f32.mrb[26].mxu1  ;;  %v1069_v59 = vpack.c.bf16 %v1014_v58, %v1013_v57  ;;  %v2537_v58 = vld [vmem:[#allocation4 + $0x6] ss:$0 sm:$0xff] }
 0x486   :  { %v2787_v3 = vpop.f32.mrb[27].mxu1  ;;  %v780_v4 = vsel %vm773_vm7, %v771_v0, -inf  ;;  %v772_v5 = vadd.f32 %v3190_v35, %v758_v61 }
 0x487   :  { %781 = vmax.xlane.f32.xlu1 %v780_v4 }
 0x488   :  { %v783_v6 = vsel %vm773_vm7, %v772_v5, -inf }
 0x489   :  { %784 = vmax.xlane.f32.xlu0 %v783_v6 }
 0x50c   :  { %v776_v7 = vpop.xlane.xlu1 %775 }
 0x50d   :  { %v786_v8 = vsub.f32 %v769_v50, %v776_v7 }
 0x50e   :  { %v779_v9 = vpop.xlane.xlu0 %778 }
 0x50f   :  { %v790_v10 = vmul.f32 1.442695, %v786_v8  ;;  %v787_v12 = vsub.f32 %v770_v54, %v779_v9  ;;  %v1011_v54 = vld [vmem:[#allocation2 + $0xe0] sm:$0xff] }
 0x510   :  { %v1017_v56 = vpack.c.bf16 %v1012_v55, %v1011_v54 }
 0x511   :  { %3016 = vpow2.f32 %v790_v10  ;;  %v792_v13 = vmul.f32 1.442695, %v787_v12 }
 0x513   :  { %3018 = vpow2.f32 %v792_v13 }
 0x514   :  { %v782_v14 = vpop.xlane.xlu1 %781 }
 0x515   :  { %v788_v15 = vsub.f32 %v771_v0, %v782_v14 }
 0x516   :  { %v785_v16 = vpop.xlane.xlu0 %784 }
 0x517   :  { %v794_v17 = vmul.f32 1.442695, %v788_v15  ;;  %v789_v18 = vsub.f32 %v772_v5, %v785_v16 }
 0x519   :  { %3020 = vpow2.f32 %v794_v17  ;;  %v796_v19 = vmul.f32 1.442695, %v789_v18 }
 0x51b   :  { %v3017_v20 = vpop.eup %3016  ;;  %3022 = vpow2.f32 %v796_v19 }
 0x51c   :  { %v798_v21 = vsel %vm773_vm7, %v3017_v20, 0.0 }
 0x51d   :  { %v3019_v22 = vpop.eup %3018  ;;  %799 = vadd.xlane.f32.xlu1 %v798_v21 }
 0x51e   :  { %v801_v23 = vsel %vm773_vm7, %v3019_v22, 0.0 }
 0x51f   :  { %802 = vadd.xlane.f32.xlu0 %v801_v23 }
 0x523   :  { %v3021_v24 = vpop.eup %3020 }
 0x524   :  { %v804_v25 = vsel %vm773_vm7, %v3021_v24, 0.0 }
 0x525   :  { %v3023_v26 = vpop.eup %3022  ;;  %805 = vadd.xlane.f32.xlu1 %v804_v25 }
 0x526   :  { %v807_v27 = vsel %vm773_vm7, %v3023_v26, 0.0 }
 0x527   :  { %808 = vadd.xlane.f32.xlu0 %v807_v27 }
 0x536   :  { %518 = vrot.lane.b32.xlu1 %v3261_v11, %s3130_s0 }
 0x5aa   :  { %v800_v28 = vpop.xlane.xlu1 %799 }
 0x5ab   :  { %3024 = vrcp.f32 %v800_v28 }
 0x5ac   :  { %v803_v29 = vpop.xlane.xlu0 %802 }
 0x5ad   :  { %3026 = vrcp.f32 %v803_v29 }
 0x5b2   :  { %v806_v30 = vpop.xlane.xlu1 %805 }
 0x5b3   :  { %3028 = vrcp.f32 %v806_v30 }
 0x5b4   :  { %v809_v31 = vpop.xlane.xlu0 %808 }
 0x5b5   :  { %v3025_v33 = vpop.eup %3024  ;;  %3030 = vrcp.f32 %v809_v31 }
 0x5b6   :  { %v811_v34 = vmul.f32 %v3025_v33, %v3017_v20  ;;  %v519_v37 = vpop.permute.xlu1 %518  ;;  %v2535_v20 = vld [vmem:[#allocation4 + $0x5] ss:$0 sm:$0xff] }
 0x5b7   :  { %v3027_v39 = vpop.eup %3026  ;;  %v556_v40 = vadd.f32 %v3282_v36, %v519_v37  ;;  %v559_v43 = vadd.f32 %v3287_v38, %v519_v37 }
 0x5b8   :  { %v813_v44 = vmul.f32 %v3027_v39, %v3019_v22  ;;  %v818_v45 = vpack.c.bf16 %v811_v34, %v811_v34 }
 0x5b9   :  { %v824_v46 = vpack.c.bf16 %v556_v40, %v556_v40  ;;  %v825_v11 = vpack.c.bf16 %v559_v43, %v559_v43 }
 0x5ba   :  { %2791 = vmatmul.mubr.msk.bf16.vlgmr.msra.gmra.mrb[16].mxu0 %vm773_vm7, %v818_v45  ;;  %v819_v47 = vpack.c.bf16 %v813_v44, %v813_v44 }
 0x5bb   :  { %v923_v48 = vsel %vm829_vm6, %v824_v46, 0  ;;  %v969_v49 = vsel %vm829_vm6, %v825_v11, 0  ;;  %2802 = vmatprep.mubr.msk.bf16.mxu0 %vm3131_vm4, %v3128_v1 }
 0x5bc   :  { %2797 = vmatmul.mubr.msk.bf16.vlgmr.msra.gmra.mrb[28].mxu1 %vm773_vm7, %v819_v47  ;;  %2801 = vmatpush3.bf16.msra.mxu0 %v923_v48  ;;  %v1158_v47 = vld [vmem:[#allocation2 + $0x100] sm:$0xff] }
 0x5bd   :  { %v3029_v36 = vpop.eup %3028  ;;  %2807 = vmatpush3.bf16.msra.mxu1 %v969_v49  ;;  %2808 = vmatprep.mubr.msk.bf16.mxu1 %vm3131_vm4, %v3128_v1  ;;  %v1160_v49 = vld [vmem:[#allocation2 + $0x110] sm:$0xff] }
 0x5be   :  { %v815_v38 = vmul.f32 %v3029_v36, %v3021_v24  ;;  %2812 = vmatprep.subr.bf16.mxu0 %v3128_v1  ;;  %2818 = vmatprep.subr.bf16.mxu1 %v3128_v1  ;;  %v1161_v36 = vld [vmem:[#allocation2 + $0x118] sm:$0xff] }
 0x5bf   :  { %v3031_v50 = vpop.eup %3030 }
 0x5c0   :  { %v817_v51 = vmul.f32 %v3031_v50, %v3023_v26  ;;  %v820_v52 = vpack.c.bf16 %v815_v38, %v815_v38  ;;  %v1165_v38 = vpack.c.bf16 %v1161_v36, %v1160_v49 }
 0x5c2   :  { %2803 = vmatmul.mubr.msk.bf16.vlgmr.msra.gmra.mrb[20].mxu0 %vm773_vm7, %v820_v52  ;;  %v821_v53 = vpack.c.bf16 %v817_v51, %v817_v51 }
 0x5c3   :  { %2814 = vmatprep.mubr.msk.bf16.mxu0 %vm3131_vm4, %v3128_v1  ;;  %2813 = vmatpush3.bf16.msra.mxu0 %v1017_v56 }
 0x5c4   :  { %2809 = vmatmul.mubr.msk.bf16.vlgmr.msra.gmra.mrb[32].mxu1 %vm773_vm7, %v821_v53  ;;  %2824 = vmatprep.subr.bf16.mxu0 %v3128_v1 }
 0x5c5   :  { %2820 = vmatprep.mubr.msk.bf16.mxu1 %vm3131_vm4, %v3128_v1  ;;  %2819 = vmatpush3.bf16.msra.mxu1 %v1069_v59 }
 0x5c6   :  { %2832 = vmatprep.subr.bf16.mxu1 %v3128_v1 }
 0x68d   :  { %v867_v60 = vpop.f32.mrb[16].mxu0 }
 0x68e   :  { %v2792_v61 = vpop.f32.mrb[17].mxu0 }
 0x68f   :  { %v870_v62 = vpop.f32.mrb[18].mxu0  ;;  %v913_v63 = vpop.f32.mrb[28].mxu1 }
 0x690   :  { %v1016_v0 = vpack.c.bf16 %v913_v63, %v867_v60  ;;  %v2793_v2 = vpop.f32.mrb[19].mxu0  ;;  %v2798_v3 = vpop.f32.mrb[29].mxu1  ;;  %v2538_v62 = vld [vmem:[#allocation4 + $0x7] ss:$0 sm:$0xff] }
 0x691   :  { %v916_v4 = vpop.f32.mrb[30].mxu1 }
 0x692   :  { %v2799_v5 = vpop.f32.mrb[31].mxu1  ;;  %2815 = vmatmul.mubr.msk.bf16.vlgmr.msra.gmra.mrb[24].mxu0 %vm570_vm5, %v1016_v0  ;;  %v1232_v4 = vld [vmem:[#allocation2 + $0x120] sm:$0xff] }
 0x693   :  { %2828 = vmatprep.mubr.msk.bf16.mxu0 %vm3131_vm4, %v3128_v1  ;;  %v1233_v5 = vld [vmem:[#allocation2 + $0x128] sm:$0xff] }
 0x695   :  { %v959_v6 = vpop.f32.mrb[20].mxu0 }
 0x696   :  { %v2804_v7 = vpop.f32.mrb[21].mxu0 }
 0x697   :  { %v962_v8 = vpop.f32.mrb[22].mxu0  ;;  %v1005_v9 = vpop.f32.mrb[32].mxu1  ;;  %v1242_v7 = vpack.c.bf16 %v1233_v5, %v1232_v4 }
 0x698   :  { %v1068_v10 = vpack.c.bf16 %v1005_v9, %v959_v6  ;;  %v2805_v12 = vpop.f32.mrb[23].mxu0  ;;  %v2810_v13 = vpop.f32.mrb[33].mxu1  ;;  %v1234_v6 = vld [vmem:[#allocation2 + $0x130] sm:$0xff]  ;;  %v1235_v8 = vld [vmem:[#allocation2 + $0x138] sm:$0xff] }
 0x699   :  { %v1008_v14 = vpop.f32.mrb[34].mxu1  ;;  %v1243_v9 = vpack.c.bf16 %v1235_v8, %v1234_v6  ;;  %v1237_v12 = vld [vmem:[#allocation2 + $0x148] sm:$0xff] }
 0x69a   :  { %v2811_v15 = vpop.f32.mrb[35].mxu1  ;;  %2821 = vmatmul.mubr.msk.bf16.vlgmr.msra.gmra.mrb[36].mxu1 %vm570_vm5, %v1068_v10  ;;  %v1236_v10 = vld [vmem:[#allocation2 + $0x140] sm:$0xff]  ;;  %v1238_v14 = vld [vmem:[#allocation2 + $0x150] sm:$0xff] }
 0x69b   :  { %2840 = vmatprep.mubr.msk.bf16.mxu1 %vm3131_vm4, %v3128_v1  ;;  %2833 = vmatpush3.bf16.msra.mxu1 %v1242_v7  ;;  %v1244_v13 = vpack.c.bf16 %v1237_v12, %v1236_v10  ;;  %v1239_v15 = vld [vmem:[#allocation2 + $0x158] sm:$0xff] }
 0x69c   :  { %2834 = vmatprep.subr.bf16.mxu1 %v3128_v1 }
 0x69f   :  { %2835 = vmatpush3.bf16.msra.mxu1 %v1243_v9 }
 0x6a0   :  { %2836 = vmatprep.subr.bf16.mxu1 %v3128_v1 }
 0x6a3   :  { %2837 = vmatpush3.bf16.msra.mxu1 %v1244_v13 }
 0x6a4   :  { %2838 = vmatprep.subr.bf16.mxu1 %v3128_v1 }
 0x765   :  { %v1055_v16 = vpop.f32.mrb[24].mxu0 }
 0x766   :  { %v2816_v17 = vpop.f32.mrb[25].mxu0  ;;  %v1066_v21 = vadd.f32 %v2535_v20, %v1055_v16  ;;  %v1245_v16 = vpack.c.bf16 %v1239_v15, %v1238_v14  ;;  %v1342_v15 = vld [vmem:[#allocation2 + $0x180] sm:$0xff] }
 0x767   :  { %v1058_v18 = vpop.f32.mrb[26].mxu0  ;;  %v2539_v17 = vld [vmem:[#allocation4 + $0x8] ss:$0 sm:$0xff] }
 0x768   :  { %v2817_v19 = vpop.f32.mrb[27].mxu0  ;;  %v1067_v23 = vadd.f32 %v2535_v20, %v1058_v18  ;;  %2839 = vmatpush3.bf16.msra.mxu1 %v1245_v16  ;;  %v1343_v16 = vld [vmem:[#allocation2 + $0x188] sm:$0xff] }
 0x769   :  { %2860 = vmatprep.subr.bf16.mxu1 %v3128_v1 }
 0x76d   :  { %v1107_v22 = vpop.f32.mrb[36].mxu1 }
 0x76e   :  { %v1114_v24 = vadd.f32 %v1107_v22, %v1066_v21  ;;  %v2822_v25 = vpop.f32.mrb[37].mxu1 }
 0x76f   :  { %v1110_v26 = vpop.f32.mrb[38].mxu1 }
 0x770   :  { %v1115_v27 = vadd.f32 %v1110_v26, %v1067_v23  ;;  %v2823_v28 = vpop.f32.mrb[39].mxu1  ;;  %v1116_v29 = vadd.f32 %v1114_v24, %v3221_v41 }
 0x772   :  { %v1120_v30 = vsel %vm176_vm3, %v1116_v29, 0.0  ;;  %v1117_v31 = vadd.f32 %v1115_v27, %v3223_v42  ;;  %v1159_v42 = vld [vmem:[#allocation2 + $0x108] sm:$0xff] }
 0x773   :  { %1121 = vadd.xlane.f32.xlu0 %v1120_v30  ;;  %v1164_v48 = vpack.c.bf16 %v1159_v42, %v1158_v47  ;;  %v2541_v47 = vld [vmem:[#allocation4 + $0x9] ss:$0 sm:$0xff] }
 0x774   :  { %v1123_v33 = vsel %vm176_vm3, %v1117_v31, 0.0 }
 0x775   :  { %2825 = vmatpush3.bf16.msra.mxu0 %v1164_v48 }
 0x776   :  { %2826 = vmatprep.subr.bf16.mxu0 %v3128_v1 }
 0x777   :  { %1124 = vadd.xlane.f32.xlu0 %v1123_v33 }
 0x779   :  { %2827 = vmatpush3.bf16.msra.mxu0 %v1165_v38 }
 0x77a   :  { %2844 = vmatprep.subr.bf16.mxu0 %v3128_v1 }
 0x800   :  { %v1122_v34 = vpop.xlane.xlu0 %1121 }
 0x801   :  { %v1126_v37 = vmul.f32 0.03125, %v1122_v34 }
 0x803   :  { %v1128_v39 = vsub.f32 %v1116_v29, %v1126_v37 }
 0x804   :  { %v1125_v40 = vpop.xlane.xlu0 %1124 }
 0x805   :  { %v1127_v43 = vmul.f32 0.03125, %v1125_v40  ;;  %v1130_v44 = vmul.f32 %v1128_v39, %v1128_v39 }
 0x807   :  { %v1129_v45 = vsub.f32 %v1117_v31, %v1127_v43  ;;  %v1132_v46 = vsel %vm176_vm3, %v1130_v44, 0.0 }
 0x808   :  { %1133 = vadd.xlane.f32.xlu0 %v1132_v46 }
 0x809   :  { %v1131_v11 = vmul.f32 %v1129_v45, %v1129_v45 }
 0x80b   :  { %v1135_v41 = vsel %vm176_vm3, %v1131_v11, 0.0 }
 0x80c   :  { %1136 = vadd.xlane.f32.xlu0 %v1135_v41 }
 0x895   :  { %v1134_v50 = vpop.xlane.xlu0 %1133 }
 0x896   :  { %v1138_v51 = vmul.f32 0.03125, %v1134_v50 }
 0x898   :  { %v1140_v52 = vadd.f32 1e-12, %v1138_v51 }
 0x899   :  { %v1137_v53 = vpop.xlane.xlu0 %1136 }
 0x89a   :  { %3032 = vrsqrt.f32 %v1140_v52  ;;  %v1139_v54 = vmul.f32 0.03125, %v1137_v53 }
 0x89c   :  { %v1141_v55 = vadd.f32 1e-12, %v1139_v54 }
 0x89e   :  { %3034 = vrsqrt.f32 %v1141_v55  ;;  %v1338_v55 = vld [vmem:[#allocation2 + $0x160] sm:$0xff] }
 0x8a4   :  { %v3033_v56 = vpop.eup %3032 }
 0x8a5   :  { %v1144_v57 = vmul.f32 %v3033_v56, %v1128_v39  ;;  %v1339_v56 = vld [vmem:[#allocation2 + $0x168] sm:$0xff] }
 0x8a7   :  { %v1150_v60 = vmul.f32 %v2537_v58, %v1144_v57  ;;  %v1353_v57 = vpack.c.bf16 %v1339_v56, %v1338_v55 }
 0x8a8   :  { %v3035_v59 = vpop.eup %3034 }
 0x8a9   :  { %v1145_v61 = vmul.f32 %v3035_v59, %v1129_v45  ;;  %v3337_v0 = vadd.f32 %v2538_v62, %v1150_v60  ;;  %v1341_v59 = vld [vmem:[#allocation2 + $0x178] sm:$0xff]  ;;  %v1346_v60 = vld [vmem:[#allocation2 + $0x1a0] sm:$0xff] }
 0x8ab   :  { %v1151_v63 = vmul.f32 %v2537_v58, %v1145_v61  ;;  %v1340_v58 = vld [vmem:[#allocation2 + $0x170] sm:$0xff]  ;;  %v1347_v61 = vld [vmem:[#allocation2 + $0x1a8] sm:$0xff] }
 0x8ad   :  { %v3339_v2 = vadd.f32 %v2538_v62, %v1151_v63  ;;  %v1354_v62 = vpack.c.bf16 %v1341_v59, %v1340_v58  ;;  %v1450_v63 = vpack.c.bf16 %v1347_v61, %v1346_v60 }
 0x8af   :  { %v1163_v3 = vpack.c.bf16 %v3339_v2, %v3337_v0 }
 0x8b1   :  { %2829 = vmatmul.mubr.msk.bf16.vlgmr.msra.gmra.mrb[28].mxu0 %vm176_vm3, %v1163_v3 }
 0x8b2   :  { %2848 = vmatprep.mubr.msk.bf16.mxu0 %vm3131_vm4, %v3128_v1  ;;  %2845 = vmatpush3.bf16.msra.mxu0 %v1353_v57 }
 0x8b3   :  { %2846 = vmatprep.subr.bf16.mxu0 %v3128_v1 }
 0x8b6   :  { %2847 = vmatpush3.bf16.msra.mxu0 %v1354_v62 }
 0x8b7   :  { %2852 = vmatprep.subr.bf16.mxu0 %v3128_v1 }
 0x984   :  { %v1207_v18 = vpop.f32.mrb[28].mxu0 }
 0x985   :  { %v1208_v19 = vadd.f32 %v2539_v17, %v1207_v18  ;;  %v2830_v20 = vpop.f32.mrb[29].mxu0  ;;  %v1344_v18 = vld [vmem:[#allocation2 + $0x190] sm:$0xff] }
 0x986   :  { %v1210_v21 = vpop.f32.mrb[30].mxu0 }
 0x987   :  { %v1216_v22 = vmul.f32 0.044715, %v1208_v19  ;;  %v1211_v23 = vadd.f32 %v2539_v17, %v1210_v21  ;;  %v2831_v24 = vpop.f32.mrb[31].mxu0  ;;  %v1214_v43 = vmul.f32 0.5, %v1208_v19  ;;  %v1403_v17 = vpack.c.bf16 %v1343_v16, %v1342_v15  ;;  %v3369_v21 = vld [vmem:[#allocation4 + $0xd] ss:$0 sm:$0xff] }
 0x988   :  { %v3417_v15 = vld [vmem:[#allocation4 + $0xe] ss:$0 sm:$0xff] }
 0x989   :  { %v1218_v25 = vmul.f32 %v1216_v22, %v1208_v19  ;;  %v1217_v26 = vmul.f32 0.044715, %v1211_v23  ;;  %v1215_v44 = vmul.f32 0.5, %v1211_v23  ;;  %v3371_v22 = vld [vmem:[#allocation4 + $0xc] ss:$0 sm:$0xff] }
 0x98b   :  { %v1220_v27 = vmul.f32 %v1218_v25, %v1208_v19  ;;  %v1219_v28 = vmul.f32 %v1217_v26, %v1211_v23 }
 0x98d   :  { %v1222_v29 = vadd.f32 %v1220_v27, %v1208_v19  ;;  %v1221_v30 = vmul.f32 %v1219_v28, %v1211_v23  ;;  %v1345_v19 = vld [vmem:[#allocation2 + $0x198] sm:$0xff] }
 0x98e   :  { %v1404_v20 = vpack.c.bf16 %v1345_v19, %v1344_v18 }
 0x98f   :  { %v1224_v31 = vmul.f32 0.7978846, %v1222_v29  ;;  %v1223_v33 = vadd.f32 %v1221_v30, %v1211_v23 }
 0x991   :  { %3036 = vtanh.f32 %v1224_v31  ;;  %v1225_v34 = vmul.f32 0.7978846, %v1223_v33  ;;  %v2543_v31 = vld [vmem:[#allocation4 + $0xa] ss:$0 sm:$0xff] }
 0x993   :  { %3038 = vtanh.f32 %v1225_v34 }
 0x99b   :  { %v3037_v37 = vpop.eup %3036 }
 0x99c   :  { %v1228_v39 = vadd.f32 1.0, %v3037_v37 }
 0x99d   :  { %v3039_v40 = vpop.eup %3038 }
 0x99e   :  { %v1229_v45 = vadd.f32 1.0, %v3039_v40  ;;  %v1230_v46 = vmul.f32 %v1228_v39, %v1214_v43  ;;  %v2544_v39 = vld [vmem:[#allocation4 + $0xb] ss:$0 sm:$0xff] }
 0x9a0   :  { %v1231_v11 = vmul.f32 %v1229_v45, %v1215_v44 }
 0x9a2   :  { %v1241_v41 = vpack.c.bf16 %v1231_v11, %v1230_v46 }
 0x9a4   :  { %2841 = vmatmul.mubr.msk.bf16.vlgmr.msra.gmra.mrb[40].mxu1 %vm1250_vm8, %v1241_v41 }
 0x9a5   :  { %2864 = vmatprep.mubr.msk.bf16.mxu1 %vm3131_vm4, %v3128_v1  ;;  %2861 = vmatpush3.bf16.msra.mxu1 %v1450_v63 }
 0x9a6   :  { %2862 = vmatprep.subr.bf16.mxu1 %v3128_v1 }
 0xa77   :  { %v1288_v42 = vpop.f32.mrb[40].mxu1 }
 0xa78   :  { %v1289_v48 = vadd.f32 %v2541_v47, %v1288_v42  ;;  %v2842_v49 = vpop.f32.mrb[41].mxu1 }
 0xa79   :  { %v1291_v36 = vpop.f32.mrb[42].mxu1 }
 0xa7a   :  { %v1292_v38 = vadd.f32 %v2541_v47, %v1291_v36  ;;  %v2843_v50 = vpop.f32.mrb[43].mxu1  ;;  %v1295_v51 = vadd.f32 %v1289_v48, %v3337_v0  ;;  %v1348_v0 = vld [vmem:[#allocation2 + $0x1b0] sm:$0xff] }
 0xa7c   :  { %v1299_v52 = vsel %vm176_vm3, %v1295_v51, 0.0  ;;  %v1296_v53 = vadd.f32 %v1292_v38, %v3339_v2  ;;  %v1349_v2 = vld [vmem:[#allocation2 + $0x1b8] sm:$0xff] }
 0xa7d   :  { %1300 = vadd.xlane.f32.xlu1 %v1299_v52  ;;  %v1451_v3 = vpack.c.bf16 %v1349_v2, %v1348_v0 }
 0xa7e   :  { %v1302_v54 = vsel %vm176_vm3, %v1296_v53, 0.0 }
 0xa7f   :  { %1303 = vadd.xlane.f32.xlu0 %v1302_v54  ;;  %2863 = vmatpush3.bf16.msra.mxu1 %v1451_v3 }
 0xa80   :  { %2876 = vmatprep.subr.bf16.mxu1 %v3128_v1 }
 0xa8e   :  { %1499 = vrot.lane.b32.xlu1 %v1353_v57, %s3130_s0 }
 0xa92   :  { %1506 = vrot.lane.b32.xlu1 %v3371_v22, %s3130_s0 }
 0xb0a   :  { %v1301_v4 = vpop.xlane.xlu1 %1300 }
 0xb0b   :  { %v1305_v5 = vmul.f32 0.03125, %v1301_v4 }
 0xb0c   :  { %v1304_v6 = vpop.xlane.xlu0 %1303 }
 0xb0d   :  { %v1307_v7 = vsub.f32 %v1295_v51, %v1305_v5  ;;  %v1306_v8 = vmul.f32 0.03125, %v1304_v6 }
 0xb0e   :  { %v1500_v41 = vpop.permute.xlu1 %1499 }
 0xb0f   :  { %v1308_v9 = vsub.f32 %v1296_v53, %v1306_v8  ;;  %v1309_v10 = vmul.f32 %v1307_v7, %v1307_v7 }
 0xb11   :  { %v1311_v12 = vsel %vm176_vm3, %v1309_v10, 0.0  ;;  %v1310_v13 = vmul.f32 %v1308_v9, %v1308_v9 }
 0xb12   :  { %1312 = vadd.xlane.f32.xlu0 %v1311_v12 }
 0xb13   :  { %v1314_v14 = vsel %vm176_vm3, %v1310_v13, 0.0 }
 0xb16   :  { %1315 = vadd.xlane.f32.xlu0 %v1314_v14 }
 0xb2c   :  { %1552 = vrot.lane.b32.xlu0 %v1403_v17, %s3130_s0 }
 0xb30   :  { %1554 = vrot.lane.b32.xlu0 %v1404_v20, %s3130_s0 }
 0xb34   :  { %1501 = vrot.lane.b32.xlu0 %v1354_v62, %s3130_s0 }
 0xb38   :  { %1605 = vrot.lane.b32.xlu0 %v1450_v63, %s3130_s0 }
 0xb3c   :  { %1607 = vrot.lane.b32.xlu0 %v1451_v3, %s3130_s0 }
 0xb40   :  { %1559 = vrot.lane.b32.xlu0 %v3369_v21, %s3130_s0 }
 0xb9f   :  { %v1313_v23 = vpop.xlane.xlu0 %1312 }
 0xba0   :  { %v1317_v24 = vmul.f32 0.03125, %v1313_v23 }
 0xba2   :  { %v1319_v25 = vadd.f32 1e-12, %v1317_v24 }
 0xba3   :  { %v1316_v26 = vpop.xlane.xlu0 %1315 }
 0xba4   :  { %3040 = vrsqrt.f32 %v1319_v25  ;;  %v1318_v27 = vmul.f32 0.03125, %v1316_v26 }
 0xba6   :  { %v1320_v28 = vadd.f32 1e-12, %v1318_v27 }
 0xba7   :  { %v1553_v45 = vpop.permute.xlu0 %1552 }
 0xba8   :  { %3042 = vrsqrt.f32 %v1320_v28 }
 0xbab   :  { %v1555_v11 = vpop.permute.xlu0 %1554 }
 0xbae   :  { %v3041_v29 = vpop.eup %3040 }
 0xbaf   :  { %v1323_v30 = vmul.f32 %v3041_v29, %v1307_v7  ;;  %v1502_v47 = vpop.permute.xlu0 %1501 }
 0xbb1   :  { %v1329_v34 = vmul.f32 %v2543_v31, %v1323_v30 }
 0xbb2   :  { %v3043_v33 = vpop.eup %3042 }
 0xbb3   :  { %v1324_v37 = vmul.f32 %v3043_v33, %v1308_v9  ;;  %v3377_v43 = vadd.f32 %v2544_v39, %v1329_v34  ;;  %v1606_v42 = vpop.permute.xlu0 %1605 }
 0xbb5   :  { %v1330_v40 = vmul.f32 %v2543_v31, %v1324_v37 }
 0xbb7   :  { %v3379_v44 = vadd.f32 %v2544_v39, %v1330_v40  ;;  %v1608_v48 = vpop.permute.xlu0 %1607 }
 0xbb9   :  { %v1337_v46 = vpack.c.bf16 %v3379_v44, %v3377_v43 }
 0xbbb   :  { %2849 = vmatmul.mubr.msk.bf16.vlgmr.msra.gmra.mrb[32].mxu0 %vm176_vm3, %v1337_v46  ;;  %2865 = vmatmul.mubr.msk.bf16.vlgmr.msra.gmra.mrb[44].mxu1 %vm176_vm3, %v1337_v46  ;;  %v1560_v55 = vpop.permute.xlu0 %1559 }
 0xbbc   :  { %2853 = vmatpush3.bf16.msra.mxu0 %v1403_v17  ;;  %2877 = vmatpush3.bf16.msra.mxu1 %v1553_v45 }
 0xbbd   :  { %2854 = vmatprep.subr.bf16.mxu0 %v3128_v1  ;;  %2878 = vmatprep.subr.bf16.mxu1 %v3128_v1 }
 0xbbe   :  { %2856 = vmatprep.mubr.msk.bf16.mxu0 %vm3131_vm4, %v3128_v1  ;;  %2880 = vmatprep.mubr.msk.bf16.mxu1 %vm3131_vm4, %v3128_v1 }
 0xbc0   :  { %2855 = vmatpush3.bf16.msra.mxu0 %v1404_v20  ;;  %2879 = vmatpush3.bf16.msra.mxu1 %v1555_v11  ;;  %v1507_v20 = vpop.permute.xlu1 %1506 }
 0xbc1   :  { %2868 = vmatprep.subr.bf16.mxu0 %v3128_v1  ;;  %2892 = vmatprep.subr.bf16.mxu1 %v3128_v1 }
 0xbc3   :  { %2857 = vmatmul.mubr.msk.bf16.vlgmr.msra.gmra.mrb[36].mxu0 %vm176_vm3, %v1337_v46  ;;  %2881 = vmatmul.mubr.msk.bf16.vlgmr.msra.gmra.mrb[48].mxu1 %vm176_vm3, %v1337_v46 }
 0xbc4   :  { %2869 = vmatpush3.bf16.msra.mxu0 %v1500_v41  ;;  %2872 = vmatprep.mubr.msk.bf16.mxu0 %vm3131_vm4, %v3128_v1 }
 0xbc5   :  { %2870 = vmatprep.subr.bf16.mxu0 %v3128_v1  ;;  %2894 = vmatprep.mubr.msk.bf16.mxu1 %vm3131_vm4, %v3128_v1 }
 0xbc8   :  { %2871 = vmatpush3.bf16.msra.mxu0 %v1502_v47 }
 0xbc9   :  { %2884 = vmatprep.subr.bf16.mxu0 %v3128_v1 }
 0xbcb   :  { %2873 = vmatmul.mubr.msk.bf16.vlgmr.msra.gmra.mrb[40].mxu0 %vm176_vm3, %v1337_v46 }
 0xbcc   :  { %2885 = vmatpush3.bf16.msra.mxu0 %v1606_v42  ;;  %2888 = vmatprep.mubr.msk.bf16.mxu0 %vm3131_vm4, %v3128_v1 }
 0xbcd   :  { %2886 = vmatprep.subr.bf16.mxu0 %v3128_v1 }
 0xbd0   :  { %2887 = vmatpush3.bf16.msra.mxu0 %v1608_v48 }
 0xbd1   :  { %2898 = vmatprep.subr.bf16.mxu0 %v3128_v1 }
 0xbd3   :  { %2889 = vmatmul.mubr.msk.bf16.vlgmr.msra.gmra.mrb[44].mxu0 %vm176_vm3, %v1337_v46 }
 0xbd4   :  { %2900 = vmatprep.mubr.msk.bf16.mxu0 %vm3131_vm4, %v3128_v1 }
 0xc8e   :  { %v1396_v49 = vpop.f32.mrb[32].mxu0  ;;  %v1490_v36 = vpop.f32.mrb[44].mxu1 }
 0xc8f   :  { %v2850_v38 = vpop.f32.mrb[33].mxu0  ;;  %v2866_v50 = vpop.f32.mrb[45].mxu1  ;;  %v1397_v7 = vadd.f32 %v3371_v22, %v1396_v49 }
 0xc90   :  { %v1399_v51 = vpop.f32.mrb[34].mxu0  ;;  %v1493_v52 = vpop.f32.mrb[46].mxu1 }
 0xc91   :  { %v2851_v53 = vpop.f32.mrb[35].mxu0  ;;  %v2867_v54 = vpop.f32.mrb[47].mxu1  ;;  %v1400_v12 = vadd.f32 %v3371_v22, %v1399_v51  ;;  %v1656_v17 = vpack.c.bf16 %v1397_v7, %v1397_v7  ;;  %v1494_v22 = vadd.f32 %v3417_v15, %v1493_v52 }
 0xc93   :  { %v1657_v23 = vpack.c.bf16 %v1400_v12, %v1400_v12  ;;  %v1905_v33 = vpack.c.bf16 %v1494_v22, %v1494_v22 }
 0xc95   :  { %v1958_v45 = vsel %vm829_vm6, %v1905_v33, 0 }
 0xc96   :  { %v1443_v56 = vpop.f32.mrb[36].mxu0  ;;  %v1596_v57 = vpop.f32.mrb[48].mxu1 }
 0xc97   :  { %v1444_v58 = vadd.f32 %v3369_v21, %v1443_v56  ;;  %v2858_v59 = vpop.f32.mrb[37].mxu0  ;;  %v2882_v60 = vpop.f32.mrb[49].mxu1  ;;  %v1597_v5 = vadd.f32 %v1596_v57, %v1560_v55 }
 0xc98   :  { %v1446_v61 = vpop.f32.mrb[38].mxu0  ;;  %v1599_v62 = vpop.f32.mrb[50].mxu1 }
 0xc99   :  { %v1660_v63 = vpack.c.bf16 %v1444_v58, %v1444_v58  ;;  %v1447_v0 = vadd.f32 %v3369_v21, %v1446_v61  ;;  %v2859_v2 = vpop.f32.mrb[39].mxu0  ;;  %v2883_v3 = vpop.f32.mrb[51].mxu1  ;;  %v1600_v9 = vadd.f32 %v1599_v62, %v1560_v55  ;;  %v1662_v13 = vpack.c.bf16 %v1597_v5, %v1597_v5 }
 0xc9a   :  { %v1491_v21 = vadd.f32 %v3417_v15, %v1490_v36 }
 0xc9b   :  { %v1668_v4 = vsel %vm570_vm5, %v1660_v63, 0  ;;  %v1661_v6 = vpack.c.bf16 %v1447_v0, %v1447_v0  ;;  %v1663_v18 = vpack.c.bf16 %v1600_v9, %v1600_v9  ;;  %v1760_v24 = vsel %vm570_vm5, %v1662_v13, 0 }
 0xc9c   :  { %2893 = vmatpush3.bf16.xpose.msra.mxu1 %v1668_v4  ;;  %v1904_v28 = vpack.c.bf16 %v1491_v21, %v1491_v21 }
 0xc9d   :  { %v1714_v8 = vsel %vm570_vm5, %v1661_v6, 0  ;;  %2904 = vmatprep.subr.bf16.mxu1 %v3128_v1  ;;  %v1806_v25 = vsel %vm570_vm5, %v1663_v18, 0 }
 0xc9e   :  { %v1543_v10 = vpop.f32.mrb[40].mxu0  ;;  %2899 = vmatpush3.bf16.xpose.msra.mxu0 %v1714_v8  ;;  %v1912_v39 = vsel %vm829_vm6, %v1904_v28, 0 }
 0xc9f   :  { %v2874_v14 = vpop.f32.mrb[41].mxu0  ;;  %2910 = vmatprep.subr.bf16.mxu0 %v3128_v1  ;;  %v1544_v26 = vadd.f32 %v1543_v10, %v1507_v20 }
 0xca0   :  { %v1546_v16 = vpop.f32.mrb[42].mxu0 }
 0xca1   :  { %v2875_v19 = vpop.f32.mrb[43].mxu0  ;;  %v1547_v29 = vadd.f32 %v1546_v16, %v1507_v20  ;;  %v1658_v34 = vpack.c.bf16 %v1544_v26, %v1544_v26 }
 0xca3   :  { %2895 = vmatmul.mubr.msk.bf16.vlgmr.msra.gmra.mrb[52].mxu1 %vm570_vm5, %v1656_v17  ;;  %v1659_v40 = vpack.c.bf16 %v1547_v29, %v1547_v29 }
 0xca4   :  { %2905 = vmatpush3.bf16.xpose.msra.mxu1 %v1760_v24  ;;  %2906 = vmatprep.mubr.msk.bf16.mxu1 %vm3131_vm4, %v3128_v1 }
 0xca5   :  { %2901 = vmatmul.mubr.msk.bf16.vlgmr.msra.gmra.mrb[48].mxu0 %vm570_vm5, %v1657_v23  ;;  %2916 = vmatprep.subr.bf16.mxu1 %v3128_v1 }
 0xca6   :  { %v3428_v27 = vpop.f32.mrb[44].mxu0  ;;  %2911 = vmatpush3.bf16.xpose.msra.mxu0 %v1806_v25  ;;  %2912 = vmatprep.mubr.msk.bf16.mxu0 %vm3131_vm4, %v3128_v1 }
 0xca7   :  { %v2890_v30 = vpop.f32.mrb[45].mxu0  ;;  %2922 = vmatprep.subr.bf16.mxu0 %v3128_v1 }
 0xca8   :  { %v3433_v31 = vpop.f32.mrb[46].mxu0 }
 0xca9   :  { %v2891_v37 = vpop.f32.mrb[47].mxu0 }
 0xcab   :  { %2907 = vmatmul.mubr.msk.bf16.vlgmr.msra.gmra.mrb[56].mxu1 %vm570_vm5, %v1658_v34 }
 0xcac   :  { %2917 = vmatpush3.bf16.msra.mxu1 %v1912_v39  ;;  %2918 = vmatprep.mubr.msk.bf16.mxu1 %vm3131_vm4, %v3128_v1 }
 0xcad   :  { %2913 = vmatmul.mubr.msk.bf16.vlgmr.msra.gmra.mrb[52].mxu0 %vm570_vm5, %v1659_v40  ;;  %2928 = vmatprep.subr.bf16.mxu1 %v3128_v1 }
 0xcae   :  { %2923 = vmatpush3.bf16.msra.mxu0 %v1958_v45  ;;  %2924 = vmatprep.mubr.msk.bf16.mxu0 %vm3131_vm4, %v3128_v1 }
 0xcaf   :  { %2934 = vmatprep.subr.bf16.mxu0 %v3128_v1 }
 0xd76   :  { %v1704_v46 = vpop.f32.mrb[52].mxu1 }
 0xd77   :  { %v1848_v11 = vmul.f32 0.25, %v1704_v46  ;;  %v2896_v41 = vpop.f32.mrb[53].mxu1 }
 0xd78   :  { %v1707_v47 = vpop.f32.mrb[54].mxu1  ;;  %v1750_v42 = vpop.f32.mrb[48].mxu0 }
 0xd79   :  { %v1849_v48 = vmul.f32 0.25, %v1750_v42  ;;  %v2897_v49 = vpop.f32.mrb[55].mxu1  ;;  %v2902_v36 = vpop.f32.mrb[49].mxu0  ;;  %v1852_v38 = vadd.f32 %v1848_v11, %v3188_v32 }
 0xd7a   :  { %v1753_v50 = vpop.f32.mrb[50].mxu0 }
 0xd7b   :  { %v2903_v51 = vpop.f32.mrb[51].mxu0  ;;  %v1856_v52 = vsel %vm773_vm7, %v1852_v38, -inf  ;;  %v1853_v53 = vadd.f32 %v1849_v48, %v3190_v35 }
 0xd7c   :  { %1857 = vmax.xlane.f32.xlu0 %v1856_v52  ;;  %v2092_v51 = vld [vmem:[#allocation2 + $0x1c0] sm:$0xff]  ;;  %v2093_v52 = vld [vmem:[#allocation2 + $0x1c8] sm:$0xff] }
 0xd7d   :  { %v1859_v54 = vsel %vm773_vm7, %v1853_v53, -inf }
 0xd7e   :  { %v1796_v55 = vpop.f32.mrb[56].mxu1  ;;  %1860 = vmax.xlane.f32.xlu1 %v1859_v54  ;;  %v2094_v54 = vld [vmem:[#allocation2 + $0x1d0] sm:$0xff] }
 0xd7f   :  { %v1850_v56 = vmul.f32 0.25, %v1796_v55  ;;  %v2908_v57 = vpop.f32.mrb[57].mxu1  ;;  %v2095_v55 = vld [vmem:[#allocation2 + $0x1d8] sm:$0xff] }
 0xd80   :  { %v1799_v58 = vpop.f32.mrb[58].mxu1  ;;  %v1842_v59 = vpop.f32.mrb[52].mxu0 }
 0xd81   :  { %v1851_v60 = vmul.f32 0.25, %v1842_v59  ;;  %v2909_v61 = vpop.f32.mrb[59].mxu1  ;;  %v2914_v62 = vpop.f32.mrb[53].mxu0  ;;  %v1854_v63 = vadd.f32 %v1850_v56, %v3188_v32  ;;  %v2150_v56 = vpack.c.bf16 %v2095_v55, %v2094_v54 }
 0xd82   :  { %v1845_v0 = vpop.f32.mrb[54].mxu0 }
 0xd83   :  { %v2915_v2 = vpop.f32.mrb[55].mxu0  ;;  %v1862_v3 = vsel %vm773_vm7, %v1854_v63, -inf  ;;  %v1855_v4 = vadd.f32 %v1851_v60, %v3190_v35 }
 0xd84   :  { %1863 = vmax.xlane.f32.xlu0 %v1862_v3 }
 0xd85   :  { %v1865_v5 = vsel %vm773_vm7, %v1855_v4, -inf }
 0xd88   :  { %1866 = vmax.xlane.f32.xlu0 %v1865_v5 }
 0xe09   :  { %v1858_v6 = vpop.xlane.xlu0 %1857 }
 0xe0a   :  { %v1868_v7 = vsub.f32 %v1852_v38, %v1858_v6 }
 0xe0b   :  { %v1861_v8 = vpop.xlane.xlu1 %1860 }
 0xe0c   :  { %v1872_v9 = vmul.f32 1.442695, %v1868_v7  ;;  %v1869_v10 = vsub.f32 %v1853_v53, %v1861_v8  ;;  %v2098_v53 = vpack.c.bf16 %v2093_v52, %v2092_v51 }
 0xe0e   :  { %3044 = vpow2.f32 %v1872_v9  ;;  %v1874_v12 = vmul.f32 1.442695, %v1869_v10 }
 0xe10   :  { %3046 = vpow2.f32 %v1874_v12 }
 0xe11   :  { %v1864_v13 = vpop.xlane.xlu0 %1863 }
 0xe12   :  { %v1870_v32 = vsub.f32 %v1854_v63, %v1864_v13 }
 0xe14   :  { %v1876_v14 = vmul.f32 1.442695, %v1870_v32 }
 0xe15   :  { %v1867_v16 = vpop.xlane.xlu0 %1866 }
 0xe16   :  { %3048 = vpow2.f32 %v1876_v14  ;;  %v1871_v17 = vsub.f32 %v1855_v4, %v1867_v16 }
 0xe18   :  { %v3045_v18 = vpop.eup %3044  ;;  %v1878_v35 = vmul.f32 1.442695, %v1871_v17  ;;  %v2563_v17 = vld [vmem:[#allocation4 + $0xf] ss:$0 sm:$0xff] }
 0xe19   :  { %v1880_v19 = vsel %vm773_vm7, %v3045_v18, 0.0 }
 0xe1a   :  { %v3047_v20 = vpop.eup %3046  ;;  %3050 = vpow2.f32 %v1878_v35  ;;  %1881 = vadd.xlane.f32.xlu1 %v1880_v19 }
 0xe1b   :  { %v1883_v21 = vsel %vm773_vm7, %v3047_v20, 0.0 }
 0xe1c   :  { %1884 = vadd.xlane.f32.xlu0 %v1883_v21 }
 0xe20   :  { %v3049_v23 = vpop.eup %3048 }
 0xe21   :  { %v1886_v24 = vsel %vm773_vm7, %v3049_v23, 0.0 }
 0xe22   :  { %1887 = vadd.xlane.f32.xlu1 %v1886_v24 }
 0xe24   :  { %v3051_v22 = vpop.eup %3050 }
 0xe25   :  { %v1889_v25 = vsel %vm773_vm7, %v3051_v22, 0.0 }
 0xe26   :  { %1890 = vadd.xlane.f32.xlu0 %v1889_v25 }
 0xe33   :  { %1612 = vrot.lane.b32.xlu1 %v3417_v15, %s3130_s0 }
 0xea7   :  { %v1882_v26 = vpop.xlane.xlu1 %1881 }
 0xea8   :  { %3052 = vrcp.f32 %v1882_v26 }
 0xea9   :  { %v1885_v28 = vpop.xlane.xlu0 %1884 }
 0xeaa   :  { %3054 = vrcp.f32 %v1885_v28 }
 0xeaf   :  { %v1888_v29 = vpop.xlane.xlu1 %1887 }
 0xeb0   :  { %3056 = vrcp.f32 %v1888_v29 }
 0xeb2   :  { %v3053_v30 = vpop.eup %3052 }
 0xeb3   :  { %v1893_v33 = vmul.f32 %v3053_v30, %v3045_v18  ;;  %v1613_v34 = vpop.permute.xlu1 %1612  ;;  %v1891_v37 = vpop.xlane.xlu0 %1890 }
 0xeb4   :  { %v3055_v39 = vpop.eup %3054  ;;  %v1650_v40 = vadd.f32 %v3428_v27, %v1613_v34  ;;  %v1653_v45 = vadd.f32 %v3433_v31, %v1613_v34  ;;  %3058 = vrcp.f32 %v1891_v37 }
 0xeb5   :  { %v1895_v46 = vmul.f32 %v3055_v39, %v3047_v20  ;;  %v1900_v11 = vpack.c.bf16 %v1893_v33, %v1893_v33 }
 0xeb6   :  { %v1906_v41 = vpack.c.bf16 %v1650_v40, %v1650_v40  ;;  %v1907_v15 = vpack.c.bf16 %v1653_v45, %v1653_v45 }
 0xeb7   :  { %2919 = vmatmul.mubr.msk.bf16.vlgmr.msra.gmra.mrb[60].mxu1 %vm773_vm7, %v1900_v11  ;;  %v1901_v47 = vpack.c.bf16 %v1895_v46, %v1895_v46 }
 0xeb8   :  { %v2004_v42 = vsel %vm829_vm6, %v1906_v41, 0  ;;  %v2050_v48 = vsel %vm829_vm6, %v1907_v15, 0  ;;  %2930 = vmatprep.mubr.msk.bf16.mxu1 %vm3131_vm4, %v3128_v1  ;;  %v2239_v41 = vld [vmem:[#allocation2 + $0x1e0] sm:$0xff] }
 0xeb9   :  { %2925 = vmatmul.mubr.msk.bf16.vlgmr.msra.gmra.mrb[56].mxu0 %vm773_vm7, %v1901_v47  ;;  %2929 = vmatpush3.bf16.msra.mxu1 %v2004_v42  ;;  %v2241_v47 = vld [vmem:[#allocation2 + $0x1f0] sm:$0xff]  ;;  %v2242_v42 = vld [vmem:[#allocation2 + $0x1f8] sm:$0xff] }
 0xeba   :  { %v3057_v27 = vpop.eup %3056  ;;  %2935 = vmatpush3.bf16.msra.mxu0 %v2050_v48  ;;  %2936 = vmatprep.mubr.msk.bf16.mxu0 %vm3131_vm4, %v3128_v1  ;;  %v2246_v48 = vpack.c.bf16 %v2242_v42, %v2241_v47 }
 0xebb   :  { %v1897_v31 = vmul.f32 %v3057_v27, %v3049_v23  ;;  %2940 = vmatprep.subr.bf16.mxu1 %v3128_v1  ;;  %2946 = vmatprep.subr.bf16.mxu0 %v3128_v1 }
 0xebd   :  { %v1902_v49 = vpack.c.bf16 %v1897_v31, %v1897_v31 }
 0xebe   :  { %v3059_v36 = vpop.eup %3058 }
 0xebf   :  { %v1899_v38 = vmul.f32 %v3059_v36, %v3051_v22  ;;  %2931 = vmatmul.mubr.msk.bf16.vlgmr.msra.gmra.mrb[64].mxu1 %vm773_vm7, %v1902_v49 }
 0xec0   :  { %2942 = vmatprep.mubr.msk.bf16.mxu1 %vm3131_vm4, %v3128_v1  ;;  %2941 = vmatpush3.bf16.msra.mxu1 %v2098_v53  ;;  %v2565_v53 = vld [vmem:[#allocation4 + $0x10] ss:$0 sm:$0xff] }
 0xec1   :  { %v1903_v50 = vpack.c.bf16 %v1899_v38, %v1899_v38  ;;  %2952 = vmatprep.subr.bf16.mxu1 %v3128_v1 }
 0xec3   :  { %2937 = vmatmul.mubr.msk.bf16.vlgmr.msra.gmra.mrb[60].mxu0 %vm773_vm7, %v1903_v50 }
 0xec4   :  { %2948 = vmatprep.mubr.msk.bf16.mxu0 %vm3131_vm4, %v3128_v1  ;;  %2947 = vmatpush3.bf16.msra.mxu0 %v2150_v56 }
 0xec5   :  { %2960 = vmatprep.subr.bf16.mxu0 %v3128_v1 }
 0xf8a   :  { %v1948_v57 = vpop.f32.mrb[60].mxu1 }
 0xf8b   :  { %v2920_v58 = vpop.f32.mrb[61].mxu1 }
 0xf8c   :  { %v1951_v59 = vpop.f32.mrb[62].mxu1  ;;  %v1994_v60 = vpop.f32.mrb[56].mxu0 }
 0xf8d   :  { %v2097_v61 = vpack.c.bf16 %v1994_v60, %v1948_v57  ;;  %v2921_v62 = vpop.f32.mrb[63].mxu1  ;;  %v2926_v63 = vpop.f32.mrb[57].mxu0  ;;  %v2566_v57 = vld [vmem:[#allocation4 + $0x11] ss:$0 sm:$0xff] }
 0xf8e   :  { %v1997_v0 = vpop.f32.mrb[58].mxu0  ;;  %v2313_v62 = vld [vmem:[#allocation2 + $0x200] sm:$0xff]  ;;  %v2314_v63 = vld [vmem:[#allocation2 + $0x208] sm:$0xff] }
 0xf8f   :  { %v2927_v2 = vpop.f32.mrb[59].mxu0  ;;  %2943 = vmatmul.mubr.msk.bf16.vlgmr.msra.gmra.mrb[68].mxu1 %vm570_vm5, %v2097_v61  ;;  %v2315_v0 = vld [vmem:[#allocation2 + $0x210] sm:$0xff] }
 0xf90   :  { %2956 = vmatprep.mubr.msk.bf16.mxu1 %vm3131_vm4, %v3128_v1  ;;  %v2323_v2 = vpack.c.bf16 %v2314_v63, %v2313_v62  ;;  %v2420_v62 = vld [vmem:[#allocation2 + $0x258] sm:$0xff] }
 0xf92   :  { %v2040_v3 = vpop.f32.mrb[64].mxu1 }
 0xf93   :  { %v2932_v4 = vpop.f32.mrb[65].mxu1 }
 0xf94   :  { %v2043_v5 = vpop.f32.mrb[66].mxu1 }
 0xf95   :  { %v2933_v6 = vpop.f32.mrb[67].mxu1  ;;  %v2317_v5 = vld [vmem:[#allocation2 + $0x220] sm:$0xff] }
 0xf96   :  { %v2086_v7 = vpop.f32.mrb[60].mxu0  ;;  %v2318_v6 = vld [vmem:[#allocation2 + $0x228] sm:$0xff] }
 0xf97   :  { %v2149_v8 = vpack.c.bf16 %v2086_v7, %v2040_v3  ;;  %v2938_v9 = vpop.f32.mrb[61].mxu0  ;;  %v2316_v3 = vld [vmem:[#allocation2 + $0x218] sm:$0xff]  ;;  %v2325_v7 = vpack.c.bf16 %v2318_v6, %v2317_v5 }
 0xf98   :  { %v2089_v10 = vpop.f32.mrb[62].mxu0  ;;  %v2324_v4 = vpack.c.bf16 %v2316_v3, %v2315_v0  ;;  %v2320_v9 = vld [vmem:[#allocation2 + $0x238] sm:$0xff] }
 0xf99   :  { %v2939_v12 = vpop.f32.mrb[63].mxu0  ;;  %2949 = vmatmul.mubr.msk.bf16.vlgmr.msra.gmra.mrb[64].mxu0 %vm570_vm5, %v2149_v8  ;;  %v2319_v8 = vld [vmem:[#allocation2 + $0x230] sm:$0xff] }
 0xf9a   :  { %2968 = vmatprep.mubr.msk.bf16.mxu0 %vm3131_vm4, %v3128_v1  ;;  %2961 = vmatpush3.bf16.msra.mxu0 %v2323_v2  ;;  %v2326_v10 = vpack.c.bf16 %v2320_v9, %v2319_v8  ;;  %v2567_v12 = vld [vmem:[#allocation4 + $0x12] ss:$0 sm:$0xff]  ;;  %v2571_v8 = vld [vmem:[#allocation4 + $0x14] ss:$0 sm:$0xff] }
 0xf9b   :  { %2962 = vmatprep.subr.bf16.mxu0 %v3128_v1 }
 0xf9e   :  { %2963 = vmatpush3.bf16.msra.mxu0 %v2324_v4 }
 0xf9f   :  { %2964 = vmatprep.subr.bf16.mxu0 %v3128_v1 }
 0xfa2   :  { %2965 = vmatpush3.bf16.msra.mxu0 %v2325_v7 }
 0xfa3   :  { %2966 = vmatprep.subr.bf16.mxu0 %v3128_v1 }
 0xfa6   :  { %2967 = vmatpush3.bf16.msra.mxu0 %v2326_v10  ;;  %v2572_v10 = vld [vmem:[#allocation4 + $0x15] ss:$0 sm:$0xff] }
0x1062   :  { %v2136_v13 = vpop.f32.mrb[68].mxu1 }
0x1063   :  { %v2944_v32 = vpop.f32.mrb[69].mxu1  ;;  %v2147_v18 = vadd.f32 %v2563_v17, %v2136_v13 }
0x1064   :  { %v2139_v14 = vpop.f32.mrb[70].mxu1 }
0x1065   :  { %v2945_v16 = vpop.f32.mrb[71].mxu1  ;;  %v2148_v19 = vadd.f32 %v2563_v17, %v2139_v14 }
0x106c   :  { %v2188_v35 = vpop.f32.mrb[64].mxu0 }
0x106d   :  { %v2195_v20 = vadd.f32 %v2188_v35, %v2147_v18  ;;  %v2950_v21 = vpop.f32.mrb[65].mxu0 }
0x106e   :  { %v2191_v23 = vpop.f32.mrb[66].mxu0 }
0x106f   :  { %v2196_v24 = vadd.f32 %v2191_v23, %v2148_v19  ;;  %v2951_v22 = vpop.f32.mrb[67].mxu0  ;;  %v2197_v25 = vadd.f32 %v2195_v20, %v3377_v43 }
0x1071   :  { %v2201_v26 = vsel %vm176_vm3, %v2197_v25, 0.0  ;;  %v2198_v28 = vadd.f32 %v2196_v24, %v3379_v44  ;;  %v2240_v44 = vld [vmem:[#allocation2 + $0x1e8] sm:$0xff] }
0x1072   :  { %2202 = vadd.xlane.f32.xlu0 %v2201_v26  ;;  %v2245_v15 = vpack.c.bf16 %v2240_v44, %v2239_v41 }
0x1073   :  { %v2204_v29 = vsel %vm176_vm3, %v2198_v28, 0.0 }
0x1074   :  { %2953 = vmatpush3.bf16.msra.mxu1 %v2245_v15 }
0x1075   :  { %2954 = vmatprep.subr.bf16.mxu1 %v3128_v1 }
0x1076   :  { %2205 = vadd.xlane.f32.xlu0 %v2204_v29 }
0x1078   :  { %2955 = vmatpush3.bf16.msra.mxu1 %v2246_v48 }
0x1079   :  { %2972 = vmatprep.subr.bf16.mxu1 %v3128_v1 }
0x10ff   :  { %v2203_v30 = vpop.xlane.xlu0 %2202 }
0x1100   :  { %v2207_v33 = vmul.f32 0.03125, %v2203_v30 }
0x1102   :  { %v2209_v34 = vsub.f32 %v2197_v25, %v2207_v33 }
0x1103   :  { %v2206_v37 = vpop.xlane.xlu0 %2205 }
0x1104   :  { %v2208_v39 = vmul.f32 0.03125, %v2206_v37  ;;  %v2211_v40 = vmul.f32 %v2209_v34, %v2209_v34 }
0x1106   :  { %v2210_v45 = vsub.f32 %v2198_v28, %v2208_v39  ;;  %v2213_v46 = vsel %vm176_vm3, %v2211_v40, 0.0 }
0x1107   :  { %2214 = vadd.xlane.f32.xlu0 %v2213_v46 }
0x1108   :  { %v2212_v11 = vmul.f32 %v2210_v45, %v2210_v45 }
0x110a   :  { %v2216_v43 = vsel %vm176_vm3, %v2212_v11, 0.0  ;;  %v2569_v11 = vld [vmem:[#allocation4 + $0x13] ss:$0 sm:$0xff] }
0x110b   :  { %2217 = vadd.xlane.f32.xlu0 %v2216_v43 }
0x1194   :  { %v2215_v27 = vpop.xlane.xlu0 %2214 }
0x1195   :  { %v2219_v31 = vmul.f32 0.03125, %v2215_v27 }
0x1197   :  { %v2221_v49 = vadd.f32 1e-12, %v2219_v31 }
0x1198   :  { %v2218_v36 = vpop.xlane.xlu0 %2217 }
0x1199   :  { %3060 = vrsqrt.f32 %v2221_v49  ;;  %v2220_v38 = vmul.f32 0.03125, %v2218_v36 }
0x119b   :  { %v2222_v50 = vadd.f32 1e-12, %v2220_v38 }
0x119d   :  { %3062 = vrsqrt.f32 %v2222_v50 }
0x11a3   :  { %v3061_v51 = vpop.eup %3060 }
0x11a4   :  { %v2225_v52 = vmul.f32 %v3061_v51, %v2209_v34 }
0x11a6   :  { %v2231_v55 = vmul.f32 %v2565_v53, %v2225_v52 }
0x11a7   :  { %v3063_v54 = vpop.eup %3062 }
0x11a8   :  { %v2226_v56 = vmul.f32 %v3063_v54, %v2210_v45  ;;  %v2237_v59 = vadd.f32 %v2566_v57, %v2231_v55 }
0x11aa   :  { %v2232_v58 = vmul.f32 %v2565_v53, %v2226_v56 }
0x11ac   :  { %v2238_v60 = vadd.f32 %v2566_v57, %v2232_v58  ;;  %v2417_v58 = vld [vmem:[#allocation2 + $0x240] sm:$0xff] }
0x11ae   :  { %v2244_v61 = vpack.c.bf16 %v2238_v60, %v2237_v59 }
0x11b0   :  { %2957 = vmatmul.mubr.msk.bf16.vlgmr.msra.gmra.mrb[72].mxu1 %vm176_vm3, %v2244_v61  ;;  %v2419_v61 = vld [vmem:[#allocation2 + $0x250] sm:$0xff] }
0x11b1   :  { %2976 = vmatprep.mubr.msk.bf16.mxu1 %vm3131_vm4, %v3128_v1  ;;  %v2425_v63 = vpack.c.bf16 %v2420_v62, %v2419_v61 }
0x1283   :  { %v2288_v13 = vpop.f32.mrb[72].mxu1 }
0x1284   :  { %v2289_v32 = vadd.f32 %v2567_v12, %v2288_v13  ;;  %v2958_v14 = vpop.f32.mrb[73].mxu1 }
0x1285   :  { %v2291_v16 = vpop.f32.mrb[74].mxu1 }
0x1286   :  { %v2297_v17 = vmul.f32 0.044715, %v2289_v32  ;;  %v2292_v18 = vadd.f32 %v2567_v12, %v2291_v16  ;;  %v2959_v35 = vpop.f32.mrb[75].mxu1  ;;  %v2295_v34 = vmul.f32 0.5, %v2289_v32 }
0x1288   :  { %v2299_v19 = vmul.f32 %v2297_v17, %v2289_v32  ;;  %v2298_v20 = vmul.f32 0.044715, %v2292_v18  ;;  %v2296_v37 = vmul.f32 0.5, %v2292_v18 }
0x128a   :  { %v2301_v21 = vmul.f32 %v2299_v19, %v2289_v32  ;;  %v2300_v23 = vmul.f32 %v2298_v20, %v2292_v18 }
0x128c   :  { %v2303_v24 = vadd.f32 %v2301_v21, %v2289_v32  ;;  %v2302_v22 = vmul.f32 %v2300_v23, %v2292_v18 }
0x128e   :  { %v2305_v25 = vmul.f32 0.7978846, %v2303_v24  ;;  %v2304_v26 = vadd.f32 %v2302_v22, %v2292_v18  ;;  %v2573_v24 = vld [vmem:[#allocation4 + $0x16] ss:$0 sm:$0xff] }
0x1290   :  { %3064 = vtanh.f32 %v2305_v25  ;;  %v2306_v28 = vmul.f32 0.7978846, %v2304_v26 }
0x1292   :  { %3066 = vtanh.f32 %v2306_v28 }
0x129a   :  { %v3065_v29 = vpop.eup %3064 }
0x129b   :  { %v2309_v30 = vadd.f32 1.0, %v3065_v29 }
0x129c   :  { %v3067_v33 = vpop.eup %3066 }
0x129d   :  { %v2310_v39 = vadd.f32 1.0, %v3067_v33  ;;  %v2311_v40 = vmul.f32 %v2309_v30, %v2295_v34  ;;  %v2575_v30 = vld [vmem:[#allocation4 + $0x17] ss:$0 sm:$0xff] }
0x129f   :  { %v2312_v45 = vmul.f32 %v2310_v39, %v2296_v37  ;;  %v2576_v39 = vld [vmem:[#allocation4 + $0x18] ss:$0 sm:$0xff] }
0x12a1   :  { %v2322_v46 = vpack.c.bf16 %v2312_v45, %v2311_v40 }
0x12a3   :  { %2969 = vmatmul.mubr.msk.bf16.vlgmr.msra.gmra.mrb[68].mxu0 %vm1250_vm8, %v2322_v46 }
0x1376   :  { %v2368_v43 = vpop.f32.mrb[68].mxu0 }
0x1377   :  { %v2369_v41 = vadd.f32 %v2569_v11, %v2368_v43  ;;  %v2970_v44 = vpop.f32.mrb[69].mxu0 }
0x1378   :  { %v2371_v15 = vpop.f32.mrb[70].mxu0 }
0x1379   :  { %v2372_v47 = vadd.f32 %v2569_v11, %v2371_v15  ;;  %v2971_v42 = vpop.f32.mrb[71].mxu0  ;;  %v2375_v48 = vadd.f32 %v2369_v41, %v2237_v59  ;;  %v2418_v59 = vld [vmem:[#allocation2 + $0x248] sm:$0xff] }
0x137b   :  { %v2379_v27 = vsel %vm176_vm3, %v2375_v48, 0.0  ;;  %v2376_v31 = vadd.f32 %v2372_v47, %v2238_v60  ;;  %v2424_v60 = vpack.c.bf16 %v2418_v59, %v2417_v58 }
0x137c   :  { %2380 = vadd.xlane.f32.xlu0 %v2379_v27 }
0x137d   :  { %v2382_v49 = vsel %vm176_vm3, %v2376_v31, 0.0  ;;  %2973 = vmatpush3.bf16.msra.mxu1 %v2424_v60 }
0x137e   :  { %2383 = vadd.xlane.f32.xlu1 %v2382_v49  ;;  %2974 = vmatprep.subr.bf16.mxu1 %v3128_v1 }
0x1381   :  { %2975 = vmatpush3.bf16.msra.mxu1 %v2425_v63 }
0x1409   :  { %v2381_v36 = vpop.xlane.xlu0 %2380 }
0x140a   :  { %v2385_v38 = vmul.f32 0.03125, %v2381_v36 }
0x140b   :  { %v2384_v50 = vpop.xlane.xlu1 %2383 }
0x140c   :  { %v2386_v51 = vmul.f32 0.03125, %v2384_v50  ;;  %v2387_v52 = vsub.f32 %v2375_v48, %v2385_v38 }
0x140e   :  { %v2388_v53 = vsub.f32 %v2376_v31, %v2386_v51  ;;  %v2389_v56 = vmul.f32 %v2387_v52, %v2387_v52 }
0x1410   :  { %v2390_v54 = vmul.f32 %v2388_v53, %v2388_v53  ;;  %v2391_v57 = vsel %vm176_vm3, %v2389_v56, 0.0 }
0x1412   :  { %v2394_v55 = vsel %vm176_vm3, %v2390_v54, 0.0 }
0x1413   :  { %2395 = vadd.xlane.f32.xlu0 %v2394_v55 }
0x1417   :  { %2392 = vadd.xlane.f32.xlu0 %v2391_v57 }
0x14a0   :  { %v2396_v0 = vpop.xlane.xlu0 %2395 }
0x14a1   :  { %v2398_v2 = vmul.f32 0.03125, %v2396_v0 }
0x14a3   :  { %v2400_v3 = vadd.f32 1e-12, %v2398_v2 }
0x14a4   :  { %v2393_v4 = vpop.xlane.xlu0 %2392 }
0x14a5   :  { %3068 = vrsqrt.f32 %v2400_v3  ;;  %v2397_v5 = vmul.f32 0.03125, %v2393_v4 }
0x14a7   :  { %v2399_v6 = vadd.f32 1e-12, %v2397_v5 }
0x14a9   :  { %3070 = vrsqrt.f32 %v2399_v6 }
0x14af   :  { %v3069_v7 = vpop.eup %3068 }
0x14b0   :  { %v2404_v9 = vmul.f32 %v3069_v7, %v2388_v53 }
0x14b2   :  { %v2410_v12 = vmul.f32 %v2571_v8, %v2404_v9 }
0x14b3   :  { %v3071_v13 = vpop.eup %3070 }
0x14b4   :  { %v2416_v32 = vadd.f32 %v2572_v10, %v2410_v12  ;;  %v2403_v14 = vmul.f32 %v3071_v13, %v2387_v52 }
0x14b6   :  { %v2423_v16 = vpack.c.bf16 %v2416_v32, %v2416_v32  ;;  %v2409_v17 = vmul.f32 %v2571_v8, %v2403_v14 }
0x14b8   :  { %v2415_v1 = vadd.f32 %v2572_v10, %v2409_v17  ;;  %v2433_v18 = vunpack.c.l.b16 %v2423_v16 }
0x14ba   :  { %v2422_v35 = vpack.c.bf16 %v2415_v1, %v2415_v1  ;;  %v2434_v20 = vrot.slane %v2433_v18, 7 }
0x14bc   :  { %v2432_v19 = vunpack.c.l.b16 %v2422_v35 }
0x14be   :  { %v2436_v21 = vsel %vm2435_vm9, %v2434_v20, %v2432_v19 }
0x14bf   :  { %v2437_v23 = vpack.c.b16 %v2436_v21, %v2436_v21 }
0x14c1   :  { %2977 = vmatmul.mubr.msk.bf16.vlgmr.msra.gmra.mrb[76].mxu1 %vm176_vm3, %v2437_v23 }
0x1594   :  { %v2475_v22 = vpop.f32.mrb[76].mxu1 }
0x1595   :  { %v2476_v25 = vadd.f32 %v2573_v24, %v2475_v22  ;;  %v2978_v26 = vpop.f32.mrb[77].mxu1 }
0x1596   :  { %v2478_v28 = vpop.f32.mrb[78].mxu1 }
0x1597   :  { %3072 = vtanh.f32 %v2476_v25  ;;  %v2979_v29 = vpop.f32.mrb[79].mxu1 }
0x15a1   :  { %v3073_v33 = vpop.eup %3072 }
0x15a2   :  { %v2487_v34 = vmul.f32 %v3073_v33, %v2575_v30 }
0x15a4   :  { %v2489_v37 = vsel %vm2488_vm10, %v2487_v34, 0.0 }
0x15a5   :  { %2490 = vadd.xlane.f32.xlu0 %v2489_v37 }
0x1632   :  { %v2491_v40 = vpop.xlane.xlu0 %2490 }
0x1633   :  { %v2497_v45 = vadd.f32 %v2576_v39, %v2491_v40 }
0x1635   :  { %v2498_v46 = vmul.f32 0.5, %v2497_v45 }
0x1637   :  { %3074 = vtanh.f32 %v2498_v46 }
0x1641   :  { %v3075_v11 = vpop.eup %3074 }
0x1642   :  { %v2500_v43 = vadd.f32 1.0, %v3075_v11 }
0x1644   :  { %v2501_v41 = vmul.f32 0.5, %v2500_v43 }
0x1646   :  { %2503 = vst.msk [vmem:[%s3513_s4] sm:$0x3] %vm2502_vm11, %v2501_v41 }
0x1647   :  { %2508 = vsyncpa [#allocation3], 1 }
0x1648   :  { %2509 = vsyncpa [#allocation5], 1 }

</bundles_post_ra>
